<compile_context>
chip_gen: v7x
topology: tpu7x:2x2x1
jax: 0.10.0
libtpu: 0.0.40
codegen_flags: <defaults>
</compile_context>

<pallas_src>
import functools

import jax
import jax.numpy as jnp
import numpy as np
from jax.experimental import pallas as pl
from jax.experimental.pallas import tpu as pltpu

_MASK_NEG = -1e9  # finite "minus infinity"


# ----------------------------------------------------------------------------
# Pallas kernel: Bw windows per grid step.
# ----------------------------------------------------------------------------
def _window_attention_kernel(
    x_ref,      # (Bw, l, dim)   f32   token slab for Bw windows
    wq_ref,     # (nh, dim, ch)  bf16  per-head q weight (scale pre-folded)
    wk_ref,     # (nh, dim, ch)  bf16  per-head k weight
    wv_ref,     # (nh, dim, ch)  bf16  per-head v weight
    bias_ref,   # (nh, l, l)     f32   relative position bias (pre-gathered)
    mask_ref,   # (nw, l, l)     f32   additive mask (0 / -1e9)
    wp_ref,     # (nh, ch, dim)  bf16  output projection, row-split per head
    bp_ref,     # (1, dim)       f32   output projection bias
    o_ref,      # (Bw, l, dim)   f32
    *,
    num_heads: int,
    head_dim: int,
    bw: int,
    seq: int,
    dim: int,
    nw_mask: int,
):
    # One fat token slab per grid step: (Bw*l, dim), bf16 for the MXU.
    x2 = x_ref[...].reshape(bw * seq, dim).astype(jnp.bfloat16)
    mask_add = mask_ref[...]                                   # (nw, l, l) f32
    acc = jnp.zeros((bw * seq, dim), jnp.float32)              # output-proj accumulator

    for h in range(num_heads):  # static unroll; head selection is leading-dim only
        # Per-head projections (MXU, bf16 in / f32 accumulate).
        q = jnp.dot(x2, wq_ref[h], preferred_element_type=jnp.float32)   # (Bw*l, ch)
        k = jnp.dot(x2, wk_ref[h], preferred_element_type=jnp.float32)
        v = jnp.dot(x2, wv_ref[h], preferred_element_type=jnp.float32)
        q3 = q.reshape(bw, seq, head_dim).astype(jnp.bfloat16)
        k3 = k.reshape(bw, seq, head_dim).astype(jnp.bfloat16)
        v3 = v.reshape(bw, seq, head_dim).astype(jnp.bfloat16)

        # Attention scores for all Bw windows of this head (scale already folded
        # into wq).  Single batched contraction, no per-head lane slicing.
        s = jnp.einsum('blc,bmc->blm', q3, k3,
                       preferred_element_type=jnp.float32)               # (Bw, l, l)
        s = s + bias_ref[h][None]
        if nw_mask == 1 or nw_mask == bw:
            s = s + mask_add
        else:
            gpb = bw // nw_mask  # whole batch groups per step
            s = (s.reshape(gpb, nw_mask, seq, seq) + mask_add[None]
                 ).reshape(bw, seq, seq)

        # Softmax in f32; reciprocal on the EUP slot.
        s = s - jnp.max(s, axis=-1, keepdims=True)
        p = jnp.exp(s)
        p = p * pl.reciprocal(jnp.sum(p, axis=-1, keepdims=True), approx=True)

        ctx = jnp.einsum('blm,bmc->blc', p.astype(jnp.bfloat16), v3,
                         preferred_element_type=jnp.float32)             # (Bw, l, ch)

        # K-split output projection: accumulate ctx_h @ wp[h] (no lane concat).
        acc = acc + jnp.dot(ctx.reshape(bw * seq, head_dim).astype(jnp.bfloat16),
                            wp_ref[h], preferred_element_type=jnp.float32)

    out = acc + bp_ref[...]                                    # (Bw*l, dim)
    o_ref[...] = out.reshape(bw, seq, dim).astype(o_ref.dtype)
    # TODO(synk): attn_drop / proj_drop are 0.0 by default (eval mode) -> identity.


# ----------------------------------------------------------------------------
# Wrapper
# ----------------------------------------------------------------------------
def window_attention(x, wqkv, rel_bias_table, rel_pos_index, mask, wp, bp,
                     *, num_heads: int, target_rows: int = 512):
    """
    x:              (n, l, dim)   float32,  n = n_batch * nw
    wqkv:           (dim, 3*dim)  output feature order: [qkv, head, ch]
    rel_bias_table: (nh, prod(2*ws-1))
    rel_pos_index:  (l*l,) int32
    mask:           (nw, l, l) bool or None
    wp, bp:         (dim, dim), (dim,)
    """
    n, l, dim = x.shape
    assert dim % num_heads == 0
    ch = dim // num_heads
    scale = float(np.power(ch, -0.5))

    # ---- static weight transforms (once per call, outside the kernel) -------
    # Split qkv weight per head; fold the 1/sqrt(head_dim) scale into wq.
    wq = wqkv[:, 0 * dim:1 * dim].reshape(dim, num_heads, ch).transpose(1, 0, 2)
    wk = wqkv[:, 1 * dim:2 * dim].reshape(dim, num_heads, ch).transpose(1, 0, 2)
    wv = wqkv[:, 2 * dim:3 * dim].reshape(dim, num_heads, ch).transpose(1, 0, 2)
    wq = (wq * scale).astype(jnp.bfloat16)
    wk = wk.astype(jnp.bfloat16)
    wv = wv.astype(jnp.bfloat16)
    wp3 = wp.reshape(num_heads, ch, dim).astype(jnp.bfloat16)   # K-split rows
    bp2 = bp.reshape(1, dim).astype(jnp.float32)

    # Gather relative position bias table -> (nh, l, l)
    rel_bias = rel_bias_table[:, rel_pos_index].reshape(num_heads, l, l)
    rel_bias = rel_bias.astype(jnp.float32)

    # Additive mask (0 kept / -1e9 masked).  Finite value avoids NaN rows.
    if mask is not None:
        nw = mask.shape[0]
        assert n % nw == 0, "windows must be laid out batch-major, nw | n"
        add_mask = jnp.where(mask, 0.0, _MASK_NEG).astype(jnp.float32)   # (nw, l, l)
        nb = n // nw
        # Batch whole groups of nw windows per grid step, targeting >=~512 rows.
        gpb = 1
        for g in range(1, nb + 1):
            if nb % g == 0 and g * nw * l <= max(target_rows, nw * l):
                gpb = g
        bw = gpb * nw
    else:
        nw = 1
        add_mask = jnp.zeros((1, l, l), dtype=jnp.float32)
        bw = 1
        for b in range(1, n + 1):
            if n % b == 0 and b * l <= max(target_rows, l):
                bw = b

    kernel = functools.partial(
        _window_attention_kernel,
        num_heads=num_heads, head_dim=ch, bw=bw, seq=l, dim=dim, nw_mask=nw)

    grid = (n // bw,)
    # NOTE: weight/bias/mask blocks are grid-invariant; Pallas fetches them once.
    return pl.pallas_call(
        kernel,
        out_shape=jax.ShapeDtypeStruct((n, l, dim), jnp.float32),
        grid=grid,
        in_specs=[
            pl.BlockSpec((bw, l, dim), lambda i: (i, 0, 0)),              # x
            pl.BlockSpec((num_heads, dim, ch), lambda i: (0, 0, 0)),      # wq
            pl.BlockSpec((num_heads, dim, ch), lambda i: (0, 0, 0)),      # wk
            pl.BlockSpec((num_heads, dim, ch), lambda i: (0, 0, 0)),      # wv
            pl.BlockSpec((num_heads, l, l), lambda i: (0, 0, 0)),         # rel bias
            pl.BlockSpec((nw, l, l), lambda i: (0, 0, 0)),                # mask
            pl.BlockSpec((num_heads, ch, dim), lambda i: (0, 0, 0)),      # wp
            pl.BlockSpec((1, dim), lambda i: (0, 0)),                     # bp
        ],
        out_specs=pl.BlockSpec((bw, l, dim), lambda i: (i, 0, 0)),
        compiler_params=pltpu.CompilerParams(
            dimension_semantics=("parallel",),          # independent windows -> 2 TCs on v7x
            vmem_limit_bytes=64 * 1024 * 1024),
    )(x, wq, wk, wv, rel_bias, add_mask, wp3, bp2)


# ----------------------------------------------------------------------------
# Pure-JAX reference (mirrors the PyTorch forward exactly, f32)
# ----------------------------------------------------------------------------
def window_attention_ref(x, wqkv, rel_bias_table, rel_pos_index, mask, wp, bp,
                         *, num_heads: int):
    n, l, dim = x.shape
    ch = dim // num_heads
    scale = float(np.power(ch, -0.5))

    qkv = x @ wqkv                                             # (n, l, 3*dim)
    qkv = qkv.reshape(n, l, 3, num_heads, ch).transpose(2, 0, 3, 1, 4)
    q, k, v = qkv[0] * scale, qkv[1], qkv[2]                   # (n, nh, l, ch)

    attn = jnp.einsum('nhlc,nhmc->nhlm', q, k)                 # (n, nh, l, l)
    bias = rel_bias_table[:, rel_pos_index].reshape(num_heads, l, l)
    attn = attn + bias[None]

    if mask is not None:
        nw = mask.shape[0]
        nb = n // nw
        attn5 = attn.reshape(nb, nw, num_heads, l, l)
        attn5 = jnp.where(mask[None, :, None], attn5, -jnp.inf)
        attn = attn5.reshape(n, num_heads, l, l)

    attn = jax.nn.softmax(attn, axis=-1)
    out = jnp.einsum('nhlm,nhmc->nhlc', attn, v)               # (n, nh, l, ch)
    out = out.transpose(0, 2, 1, 3).reshape(n, l, dim)
    return out @ wp + bp


# ----------------------------------------------------------------------------
# 3D relative position index (as the Swin-3D caller would build it)
# ----------------------------------------------------------------------------
def make_relative_position_index(window_size):
    coords = np.stack(
        np.meshgrid(*[np.arange(s) for s in window_size], indexing='ij'))
    coords = coords.reshape(len(window_size), -1)                     # (3, l)
    rel = coords[:, :, None] - coords[:, None, :]                     # (3, l, l)
    rel = rel.transpose(1, 2, 0)                                      # (l, l, 3)
    rel = rel + (np.array(window_size) - 1)                           # shift >= 0
    strides = np.cumprod(
        np.concatenate([[1], (2 * np.array(window_size[::-1]) - 1)[:-1]]))[::-1]
    idx = (rel * strides).sum(-1)                                     # (l, l)
    return idx.reshape(-1).astype(np.int32)                           # (l*l,)


# ----------------------------------------------------------------------------
# Demo
# ----------------------------------------------------------------------------
if __name__ == "__main__":
    dim = 32
    num_heads = 4
    window_size = (2, 2, 2)          # 3D window -> window_len l = 8
    l = int(np.prod(window_size))
    nw = 2                            # distinct windows in the mask
    nb = 2                            # batch of window groups
    n = nb * nw                       # total windows = 4
    bias_entries = int(np.prod(2 * np.array(window_size) - 1))  # 27

    key = jax.random.PRNGKey(0)
    k_x, k_tbl, k_qkv, k_p, k_pb, k_m = jax.random.split(key, 6)

    x = jax.random.normal(k_x, (n, l, dim), dtype=jnp.float32)

    rel_bias_table = 0.02 * jax.random.truncated_normal(
        k_tbl, -2.0, 2.0, (num_heads, bias_entries), dtype=jnp.float32)
    wqkv = 0.1 * jax.random.normal(k_qkv, (dim, 3 * dim), dtype=jnp.float32)
    # qkv_bias=False (module default) -> no qkv bias
    wp = 0.1 * jax.random.normal(k_p, (dim, dim), dtype=jnp.float32)
    bp = 0.1 * jax.random.normal(k_pb, (dim,), dtype=jnp.float32)

    rel_pos_index = jnp.asarray(make_relative_position_index(window_size))

    # Boolean mask (nw, l, l); keep diagonal True so no row is fully masked.
    mask = jax.random.bernoulli(k_m, 0.8, (nw, l, l))
    mask = mask | jnp.eye(l, dtype=bool)[None]

    out = window_attention(x, wqkv, rel_bias_table, rel_pos_index, mask, wp, bp,
                           num_heads=num_heads)
    out = jax.block_until_ready(out)

    ref = window_attention_ref(x, wqkv, rel_bias_table, rel_pos_index, mask,
                               wp, bp, num_heads=num_heads)
    ref = jax.block_until_ready(ref)

    # bf16 MXU operands with f32 accumulation -> ~1% relative error vs f32 ref.
    np.testing.assert_allclose(np.asarray(out), np.asarray(ref),
                               rtol=2e-2, atol=2e-2)
    print("KERNEL_OK")
</pallas_src>

<mosaic_0001>
module attributes {stable_mosaic.version = 11 : i64} {
  func.func @_window_attention_kernel(%arg0: i32, %arg1: memref<4x8x32xf32, #tpu.memory_space<vmem>>, %arg2: memref<4x32x8xbf16, #tpu.memory_space<vmem>>, %arg3: memref<4x32x8xbf16, #tpu.memory_space<vmem>>, %arg4: memref<4x32x8xbf16, #tpu.memory_space<vmem>>, %arg5: memref<4x8x8xf32, #tpu.memory_space<vmem>>, %arg6: memref<2x8x8xf32, #tpu.memory_space<vmem>>, %arg7: memref<4x8x32xbf16, #tpu.memory_space<vmem>>, %arg8: memref<1x32xf32, #tpu.memory_space<vmem>>, %arg9: memref<4x8x32xf32, #tpu.memory_space<vmem>>) attributes {dimension_semantics = [#tpu.dimension_semantics<parallel>], iteration_bounds = array<i64: 1>, scalar_prefetch = 0 : i64, scratch_operands = 0 : i64, tpu.core_type = #tpu.core_type<tc>, window_params = [{transform_indices = @transform_0, window_bounds = array<i64: 4, 8, 32>}, {pipeline_mode = #tpu.pipeline_mode<synchronous>, transform_indices = @transform_1, window_bounds = array<i64: 4, 32, 8>}, {pipeline_mode = #tpu.pipeline_mode<synchronous>, transform_indices = @transform_2, window_bounds = array<i64: 4, 32, 8>}, {pipeline_mode = #tpu.pipeline_mode<synchronous>, transform_indices = @transform_3, window_bounds = array<i64: 4, 32, 8>}, {pipeline_mode = #tpu.pipeline_mode<synchronous>, transform_indices = @transform_4, window_bounds = array<i64: 4, 8, 8>}, {pipeline_mode = #tpu.pipeline_mode<synchronous>, transform_indices = @transform_5, window_bounds = array<i64: 2, 8, 8>}, {pipeline_mode = #tpu.pipeline_mode<synchronous>, transform_indices = @transform_6, window_bounds = array<i64: 4, 8, 32>}, {pipeline_mode = #tpu.pipeline_mode<synchronous>, transform_indices = @transform_7, window_bounds = array<i64: 1, 32>}, {transform_indices = @transform_8, window_bounds = array<i64: 4, 8, 32>}]} {
    %c0 = arith.constant 0 : index
    %c0_0 = arith.constant 0 : index
    %c0_1 = arith.constant 0 : index
    %0 = vector.load %arg1[%c0, %c0_0, %c0_1] : memref<4x8x32xf32, #tpu.memory_space<vmem>>, vector<4x8x32xf32>
    %1 = vector.shape_cast %0 : vector<4x8x32xf32> to vector<32x32xf32>
    %2 = arith.truncf %1 : vector<32x32xf32> to vector<32x32xbf16>
    %c0_2 = arith.constant 0 : index
    %c0_3 = arith.constant 0 : index
    %c0_4 = arith.constant 0 : index
    %3 = vector.load %arg6[%c0_2, %c0_3, %c0_4] : memref<2x8x8xf32, #tpu.memory_space<vmem>>, vector<2x8x8xf32>
    %cst = arith.constant 0.000000e+00 : f32
    %4 = vector.broadcast %cst : f32 to vector<32x32xf32>
    %c0_5 = arith.constant 0 : index
    %c0_6 = arith.constant 0 : index
    %c0_7 = arith.constant 0 : index
    %5 = vector.load %arg2[%c0_5, %c0_6, %c0_7] : memref<4x32x8xbf16, #tpu.memory_space<vmem>>, vector<1x32x8xbf16>
    %6 = vector.shape_cast %5 : vector<1x32x8xbf16> to vector<32x8xbf16>
    %cst_8 = arith.constant dense<0.000000e+00> : vector<32x8xf32>
    %7 = tpu.matmul %2, %6, %cst_8 {dimension_numbers = #tpu.dot_dimension_numbers<[1], [0], [0], [1], [0, 0, 1, 1], [], []>} : vector<32x32xbf16>, vector<32x8xbf16>, vector<32x8xf32> -> vector<32x8xf32>
    %c0_9 = arith.constant 0 : index
    %c0_10 = arith.constant 0 : index
    %c0_11 = arith.constant 0 : index
    %8 = vector.load %arg3[%c0_9, %c0_10, %c0_11] : memref<4x32x8xbf16, #tpu.memory_space<vmem>>, vector<1x32x8xbf16>
    %9 = vector.shape_cast %8 : vector<1x32x8xbf16> to vector<32x8xbf16>
    %cst_12 = arith.constant dense<0.000000e+00> : vector<32x8xf32>
    %10 = tpu.matmul %2, %9, %cst_12 {dimension_numbers = #tpu.dot_dimension_numbers<[1], [0], [0], [1], [0, 0, 1, 1], [], []>} : vector<32x32xbf16>, vector<32x8xbf16>, vector<32x8xf32> -> vector<32x8xf32>
    %c0_13 = arith.constant 0 : index
    %c0_14 = arith.constant 0 : index
    %c0_15 = arith.constant 0 : index
    %11 = vector.load %arg4[%c0_13, %c0_14, %c0_15] : memref<4x32x8xbf16, #tpu.memory_space<vmem>>, vector<1x32x8xbf16>
    %12 = vector.shape_cast %11 : vector<1x32x8xbf16> to vector<32x8xbf16>
    %cst_16 = arith.constant dense<0.000000e+00> : vector<32x8xf32>
    %13 = tpu.matmul %2, %12, %cst_16 {dimension_numbers = #tpu.dot_dimension_numbers<[1], [0], [0], [1], [0, 0, 1, 1], [], []>} : vector<32x32xbf16>, vector<32x8xbf16>, vector<32x8xf32> -> vector<32x8xf32>
    %14 = vector.shape_cast %7 : vector<32x8xf32> to vector<4x8x8xf32>
    %15 = arith.truncf %14 : vector<4x8x8xf32> to vector<4x8x8xbf16>
    %16 = vector.shape_cast %10 : vector<32x8xf32> to vector<4x8x8xf32>
    %17 = arith.truncf %16 : vector<4x8x8xf32> to vector<4x8x8xbf16>
    %18 = vector.shape_cast %13 : vector<32x8xf32> to vector<4x8x8xf32>
    %19 = arith.truncf %18 : vector<4x8x8xf32> to vector<4x8x8xbf16>
    "tpu.trace_start"() <{level = 10 : i32, message = "blc,bmc->blm"}> : () -> ()
    %cst_17 = arith.constant dense<0.000000e+00> : vector<4x8x8xf32>
    %20 = tpu.matmul %15, %17, %cst_17 {dimension_numbers = #tpu.dot_dimension_numbers<[2], [2], [1], [1], [0, 0, 0, 1, 1, 1], [0], [0]>} : vector<4x8x8xbf16>, vector<4x8x8xbf16>, vector<4x8x8xf32> -> vector<4x8x8xf32>
    "tpu.trace_stop"() : () -> ()
    %c0_18 = arith.constant 0 : index
    %c0_19 = arith.constant 0 : index
    %c0_20 = arith.constant 0 : index
    %21 = vector.load %arg5[%c0_18, %c0_19, %c0_20] : memref<4x8x8xf32, #tpu.memory_space<vmem>>, vector<1x8x8xf32>
    %22 = vector.shape_cast %21 : vector<1x8x8xf32> to vector<8x8xf32>
    %23 = vector.shape_cast %22 : vector<8x8xf32> to vector<1x8x8xf32>
    %24 = vector.broadcast %23 : vector<1x8x8xf32> to vector<4x8x8xf32>
    %25 = arith.addf %20, %24 : vector<4x8x8xf32>
    %26 = vector.shape_cast %25 : vector<4x8x8xf32> to vector<2x2x8x8xf32>
    %27 = vector.shape_cast %3 : vector<2x8x8xf32> to vector<1x2x8x8xf32>
    %28 = vector.broadcast %27 : vector<1x2x8x8xf32> to vector<2x2x8x8xf32>
    %29 = arith.addf %26, %28 : vector<2x2x8x8xf32>
    %30 = vector.shape_cast %29 : vector<2x2x8x8xf32> to vector<4x8x8xf32>
    %cst_21 = arith.constant dense<0xFF800000> : vector<4x8xf32>
    %31 = vector.multi_reduction <maximumf>, %30, %cst_21 [2] : vector<4x8x8xf32> to vector<4x8xf32>
    %32 = vector.shape_cast %31 : vector<4x8xf32> to vector<4x8x1xf32>
    %33 = vector.broadcast %32 : vector<4x8x1xf32> to vector<4x8x8xf32>
    %34 = arith.subf %30, %33 : vector<4x8x8xf32>
    %35 = math.exp %34 : vector<4x8x8xf32>
    %cst_22 = arith.constant dense<0.000000e+00> : vector<4x8xf32>
    %36 = vector.multi_reduction <add>, %35, %cst_22 [2] : vector<4x8x8xf32> to vector<4x8xf32>
    %37 = vector.shape_cast %36 : vector<4x8xf32> to vector<4x8x1xf32>
    %38 = tpu.reciprocal %37 {approx = true} : vector<4x8x1xf32> -> vector<4x8x1xf32>
    %39 = vector.broadcast %38 : vector<4x8x1xf32> to vector<4x8x8xf32>
    %40 = arith.mulf %35, %39 : vector<4x8x8xf32>
    %41 = arith.truncf %40 : vector<4x8x8xf32> to vector<4x8x8xbf16>
    "tpu.trace_start"() <{level = 10 : i32, message = "blm,bmc->blc"}> : () -> ()
    %cst_23 = arith.constant dense<0.000000e+00> : vector<4x8x8xf32>
    %42 = tpu.matmul %41, %19, %cst_23 {dimension_numbers = #tpu.dot_dimension_numbers<[2], [1], [1], [2], [0, 0, 0, 1, 1, 2], [0], [0]>} : vector<4x8x8xbf16>, vector<4x8x8xbf16>, vector<4x8x8xf32> -> vector<4x8x8xf32>
    "tpu.trace_stop"() : () -> ()
    %43 = vector.shape_cast %42 : vector<4x8x8xf32> to vector<32x8xf32>
    %44 = arith.truncf %43 : vector<32x8xf32> to vector<32x8xbf16>
    %c0_24 = arith.constant 0 : index
    %c0_25 = arith.constant 0 : index
    %c0_26 = arith.constant 0 : index
    %45 = vector.load %arg7[%c0_24, %c0_25, %c0_26] : memref<4x8x32xbf16, #tpu.memory_space<vmem>>, vector<1x8x32xbf16>
    %46 = vector.shape_cast %45 : vector<1x8x32xbf16> to vector<8x32xbf16>
    %cst_27 = arith.constant dense<0.000000e+00> : vector<32x32xf32>
    %47 = tpu.matmul %44, %46, %cst_27 {dimension_numbers = #tpu.dot_dimension_numbers<[1], [0], [0], [1], [0, 0, 1, 1], [], []>} : vector<32x8xbf16>, vector<8x32xbf16>, vector<32x32xf32> -> vector<32x32xf32>
    %48 = arith.addf %4, %47 : vector<32x32xf32>
    %c1 = arith.constant 1 : index
    %c0_28 = arith.constant 0 : index
    %c0_29 = arith.constant 0 : index
    %49 = vector.load %arg2[%c1, %c0_28, %c0_29] : memref<4x32x8xbf16, #tpu.memory_space<vmem>>, vector<1x32x8xbf16>
    %50 = vector.shape_cast %49 : vector<1x32x8xbf16> to vector<32x8xbf16>
    %cst_30 = arith.constant dense<0.000000e+00> : vector<32x8xf32>
    %51 = tpu.matmul %2, %50, %cst_30 {dimension_numbers = #tpu.dot_dimension_numbers<[1], [0], [0], [1], [0, 0, 1, 1], [], []>} : vector<32x32xbf16>, vector<32x8xbf16>, vector<32x8xf32> -> vector<32x8xf32>
    %c1_31 = arith.constant 1 : index
    %c0_32 = arith.constant 0 : index
    %c0_33 = arith.constant 0 : index
    %52 = vector.load %arg3[%c1_31, %c0_32, %c0_33] : memref<4x32x8xbf16, #tpu.memory_space<vmem>>, vector<1x32x8xbf16>
    %53 = vector.shape_cast %52 : vector<1x32x8xbf16> to vector<32x8xbf16>
    %cst_34 = arith.constant dense<0.000000e+00> : vector<32x8xf32>
    %54 = tpu.matmul %2, %53, %cst_34 {dimension_numbers = #tpu.dot_dimension_numbers<[1], [0], [0], [1], [0, 0, 1, 1], [], []>} : vector<32x32xbf16>, vector<32x8xbf16>, vector<32x8xf32> -> vector<32x8xf32>
    %c1_35 = arith.constant 1 : index
    %c0_36 = arith.constant 0 : index
    %c0_37 = arith.constant 0 : index
    %55 = vector.load %arg4[%c1_35, %c0_36, %c0_37] : memref<4x32x8xbf16, #tpu.memory_space<vmem>>, vector<1x32x8xbf16>
    %56 = vector.shape_cast %55 : vector<1x32x8xbf16> to vector<32x8xbf16>
    %cst_38 = arith.constant dense<0.000000e+00> : vector<32x8xf32>
    %57 = tpu.matmul %2, %56, %cst_38 {dimension_numbers = #tpu.dot_dimension_numbers<[1], [0], [0], [1], [0, 0, 1, 1], [], []>} : vector<32x32xbf16>, vector<32x8xbf16>, vector<32x8xf32> -> vector<32x8xf32>
    %58 = vector.shape_cast %51 : vector<32x8xf32> to vector<4x8x8xf32>
    %59 = arith.truncf %58 : vector<4x8x8xf32> to vector<4x8x8xbf16>
    %60 = vector.shape_cast %54 : vector<32x8xf32> to vector<4x8x8xf32>
    %61 = arith.truncf %60 : vector<4x8x8xf32> to vector<4x8x8xbf16>
    %62 = vector.shape_cast %57 : vector<32x8xf32> to vector<4x8x8xf32>
    %63 = arith.truncf %62 : vector<4x8x8xf32> to vector<4x8x8xbf16>
    "tpu.trace_start"() <{level = 10 : i32, message = "blc,bmc->blm"}> : () -> ()
    %cst_39 = arith.constant dense<0.000000e+00> : vector<4x8x8xf32>
    %64 = tpu.matmul %59, %61, %cst_39 {dimension_numbers = #tpu.dot_dimension_numbers<[2], [2], [1], [1], [0, 0, 0, 1, 1, 1], [0], [0]>} : vector<4x8x8xbf16>, vector<4x8x8xbf16>, vector<4x8x8xf32> -> vector<4x8x8xf32>
    "tpu.trace_stop"() : () -> ()
    %c1_40 = arith.constant 1 : index
    %c0_41 = arith.constant 0 : index
    %c0_42 = arith.constant 0 : index
    %65 = vector.load %arg5[%c1_40, %c0_41, %c0_42] : memref<4x8x8xf32, #tpu.memory_space<vmem>>, vector<1x8x8xf32>
    %66 = vector.shape_cast %65 : vector<1x8x8xf32> to vector<8x8xf32>
    %67 = vector.shape_cast %66 : vector<8x8xf32> to vector<1x8x8xf32>
    %68 = vector.broadcast %67 : vector<1x8x8xf32> to vector<4x8x8xf32>
    %69 = arith.addf %64, %68 : vector<4x8x8xf32>
    %70 = vector.shape_cast %69 : vector<4x8x8xf32> to vector<2x2x8x8xf32>
    %71 = vector.shape_cast %3 : vector<2x8x8xf32> to vector<1x2x8x8xf32>
    %72 = vector.broadcast %71 : vector<1x2x8x8xf32> to vector<2x2x8x8xf32>
    %73 = arith.addf %70, %72 : vector<2x2x8x8xf32>
    %74 = vector.shape_cast %73 : vector<2x2x8x8xf32> to vector<4x8x8xf32>
    %cst_43 = arith.constant dense<0xFF800000> : vector<4x8xf32>
    %75 = vector.multi_reduction <maximumf>, %74, %cst_43 [2] : vector<4x8x8xf32> to vector<4x8xf32>
    %76 = vector.shape_cast %75 : vector<4x8xf32> to vector<4x8x1xf32>
    %77 = vector.broadcast %76 : vector<4x8x1xf32> to vector<4x8x8xf32>
    %78 = arith.subf %74, %77 : vector<4x8x8xf32>
    %79 = math.exp %78 : vector<4x8x8xf32>
    %cst_44 = arith.constant dense<0.000000e+00> : vector<4x8xf32>
    %80 = vector.multi_reduction <add>, %79, %cst_44 [2] : vector<4x8x8xf32> to vector<4x8xf32>
    %81 = vector.shape_cast %80 : vector<4x8xf32> to vector<4x8x1xf32>
    %82 = tpu.reciprocal %81 {approx = true} : vector<4x8x1xf32> -> vector<4x8x1xf32>
    %83 = vector.broadcast %82 : vector<4x8x1xf32> to vector<4x8x8xf32>
    %84 = arith.mulf %79, %83 : vector<4x8x8xf32>
    %85 = arith.truncf %84 : vector<4x8x8xf32> to vector<4x8x8xbf16>
    "tpu.trace_start"() <{level = 10 : i32, message = "blm,bmc->blc"}> : () -> ()
    %cst_45 = arith.constant dense<0.000000e+00> : vector<4x8x8xf32>
    %86 = tpu.matmul %85, %63, %cst_45 {dimension_numbers = #tpu.dot_dimension_numbers<[2], [1], [1], [2], [0, 0, 0, 1, 1, 2], [0], [0]>} : vector<4x8x8xbf16>, vector<4x8x8xbf16>, vector<4x8x8xf32> -> vector<4x8x8xf32>
    "tpu.trace_stop"() : () -> ()
    %87 = vector.shape_cast %86 : vector<4x8x8xf32> to vector<32x8xf32>
    %88 = arith.truncf %87 : vector<32x8xf32> to vector<32x8xbf16>
    %c1_46 = arith.constant 1 : index
    %c0_47 = arith.constant 0 : index
    %c0_48 = arith.constant 0 : index
    %89 = vector.load %arg7[%c1_46, %c0_47, %c0_48] : memref<4x8x32xbf16, #tpu.memory_space<vmem>>, vector<1x8x32xbf16>
    %90 = vector.shape_cast %89 : vector<1x8x32xbf16> to vector<8x32xbf16>
    %cst_49 = arith.constant dense<0.000000e+00> : vector<32x32xf32>
    %91 = tpu.matmul %88, %90, %cst_49 {dimension_numbers = #tpu.dot_dimension_numbers<[1], [0], [0], [1], [0, 0, 1, 1], [], []>} : vector<32x8xbf16>, vector<8x32xbf16>, vector<32x32xf32> -> vector<32x32xf32>
    %92 = arith.addf %48, %91 : vector<32x32xf32>
    %c2 = arith.constant 2 : index
    %c0_50 = arith.constant 0 : index
    %c0_51 = arith.constant 0 : index
    %93 = vector.load %arg2[%c2, %c0_50, %c0_51] : memref<4x32x8xbf16, #tpu.memory_space<vmem>>, vector<1x32x8xbf16>
    %94 = vector.shape_cast %93 : vector<1x32x8xbf16> to vector<32x8xbf16>
    %cst_52 = arith.constant dense<0.000000e+00> : vector<32x8xf32>
    %95 = tpu.matmul %2, %94, %cst_52 {dimension_numbers = #tpu.dot_dimension_numbers<[1], [0], [0], [1], [0, 0, 1, 1], [], []>} : vector<32x32xbf16>, vector<32x8xbf16>, vector<32x8xf32> -> vector<32x8xf32>
    %c2_53 = arith.constant 2 : index
    %c0_54 = arith.constant 0 : index
    %c0_55 = arith.constant 0 : index
    %96 = vector.load %arg3[%c2_53, %c0_54, %c0_55] : memref<4x32x8xbf16, #tpu.memory_space<vmem>>, vector<1x32x8xbf16>
    %97 = vector.shape_cast %96 : vector<1x32x8xbf16> to vector<32x8xbf16>
    %cst_56 = arith.constant dense<0.000000e+00> : vector<32x8xf32>
    %98 = tpu.matmul %2, %97, %cst_56 {dimension_numbers = #tpu.dot_dimension_numbers<[1], [0], [0], [1], [0, 0, 1, 1], [], []>} : vector<32x32xbf16>, vector<32x8xbf16>, vector<32x8xf32> -> vector<32x8xf32>
    %c2_57 = arith.constant 2 : index
    %c0_58 = arith.constant 0 : index
    %c0_59 = arith.constant 0 : index
    %99 = vector.load %arg4[%c2_57, %c0_58, %c0_59] : memref<4x32x8xbf16, #tpu.memory_space<vmem>>, vector<1x32x8xbf16>
    %100 = vector.shape_cast %99 : vector<1x32x8xbf16> to vector<32x8xbf16>
    %cst_60 = arith.constant dense<0.000000e+00> : vector<32x8xf32>
    %101 = tpu.matmul %2, %100, %cst_60 {dimension_numbers = #tpu.dot_dimension_numbers<[1], [0], [0], [1], [0, 0, 1, 1], [], []>} : vector<32x32xbf16>, vector<32x8xbf16>, vector<32x8xf32> -> vector<32x8xf32>
    %102 = vector.shape_cast %95 : vector<32x8xf32> to vector<4x8x8xf32>
    %103 = arith.truncf %102 : vector<4x8x8xf32> to vector<4x8x8xbf16>
    %104 = vector.shape_cast %98 : vector<32x8xf32> to vector<4x8x8xf32>
    %105 = arith.truncf %104 : vector<4x8x8xf32> to vector<4x8x8xbf16>
    %106 = vector.shape_cast %101 : vector<32x8xf32> to vector<4x8x8xf32>
    %107 = arith.truncf %106 : vector<4x8x8xf32> to vector<4x8x8xbf16>
    "tpu.trace_start"() <{level = 10 : i32, message = "blc,bmc->blm"}> : () -> ()
    %cst_61 = arith.constant dense<0.000000e+00> : vector<4x8x8xf32>
    %108 = tpu.matmul %103, %105, %cst_61 {dimension_numbers = #tpu.dot_dimension_numbers<[2], [2], [1], [1], [0, 0, 0, 1, 1, 1], [0], [0]>} : vector<4x8x8xbf16>, vector<4x8x8xbf16>, vector<4x8x8xf32> -> vector<4x8x8xf32>
    "tpu.trace_stop"() : () -> ()
    %c2_62 = arith.constant 2 : index
    %c0_63 = arith.constant 0 : index
    %c0_64 = arith.constant 0 : index
    %109 = vector.load %arg5[%c2_62, %c0_63, %c0_64] : memref<4x8x8xf32, #tpu.memory_space<vmem>>, vector<1x8x8xf32>
    %110 = vector.shape_cast %109 : vector<1x8x8xf32> to vector<8x8xf32>
    %111 = vector.shape_cast %110 : vector<8x8xf32> to vector<1x8x8xf32>
    %112 = vector.broadcast %111 : vector<1x8x8xf32> to vector<4x8x8xf32>
    %113 = arith.addf %108, %112 : vector<4x8x8xf32>
    %114 = vector.shape_cast %113 : vector<4x8x8xf32> to vector<2x2x8x8xf32>
    %115 = vector.shape_cast %3 : vector<2x8x8xf32> to vector<1x2x8x8xf32>
    %116 = vector.broadcast %115 : vector<1x2x8x8xf32> to vector<2x2x8x8xf32>
    %117 = arith.addf %114, %116 : vector<2x2x8x8xf32>
    %118 = vector.shape_cast %117 : vector<2x2x8x8xf32> to vector<4x8x8xf32>
    %cst_65 = arith.constant dense<0xFF800000> : vector<4x8xf32>
    %119 = vector.multi_reduction <maximumf>, %118, %cst_65 [2] : vector<4x8x8xf32> to vector<4x8xf32>
    %120 = vector.shape_cast %119 : vector<4x8xf32> to vector<4x8x1xf32>
    %121 = vector.broadcast %120 : vector<4x8x1xf32> to vector<4x8x8xf32>
    %122 = arith.subf %118, %121 : vector<4x8x8xf32>
    %123 = math.exp %122 : vector<4x8x8xf32>
    %cst_66 = arith.constant dense<0.000000e+00> : vector<4x8xf32>
    %124 = vector.multi_reduction <add>, %123, %cst_66 [2] : vector<4x8x8xf32> to vector<4x8xf32>
    %125 = vector.shape_cast %124 : vector<4x8xf32> to vector<4x8x1xf32>
    %126 = tpu.reciprocal %125 {approx = true} : vector<4x8x1xf32> -> vector<4x8x1xf32>
    %127 = vector.broadcast %126 : vector<4x8x1xf32> to vector<4x8x8xf32>
    %128 = arith.mulf %123, %127 : vector<4x8x8xf32>
    %129 = arith.truncf %128 : vector<4x8x8xf32> to vector<4x8x8xbf16>
    "tpu.trace_start"() <{level = 10 : i32, message = "blm,bmc->blc"}> : () -> ()
    %cst_67 = arith.constant dense<0.000000e+00> : vector<4x8x8xf32>
    %130 = tpu.matmul %129, %107, %cst_67 {dimension_numbers = #tpu.dot_dimension_numbers<[2], [1], [1], [2], [0, 0, 0, 1, 1, 2], [0], [0]>} : vector<4x8x8xbf16>, vector<4x8x8xbf16>, vector<4x8x8xf32> -> vector<4x8x8xf32>
    "tpu.trace_stop"() : () -> ()
    %131 = vector.shape_cast %130 : vector<4x8x8xf32> to vector<32x8xf32>
    %132 = arith.truncf %131 : vector<32x8xf32> to vector<32x8xbf16>
    %c2_68 = arith.constant 2 : index
    %c0_69 = arith.constant 0 : index
    %c0_70 = arith.constant 0 : index
    %133 = vector.load %arg7[%c2_68, %c0_69, %c0_70] : memref<4x8x32xbf16, #tpu.memory_space<vmem>>, vector<1x8x32xbf16>
    %134 = vector.shape_cast %133 : vector<1x8x32xbf16> to vector<8x32xbf16>
    %cst_71 = arith.constant dense<0.000000e+00> : vector<32x32xf32>
    %135 = tpu.matmul %132, %134, %cst_71 {dimension_numbers = #tpu.dot_dimension_numbers<[1], [0], [0], [1], [0, 0, 1, 1], [], []>} : vector<32x8xbf16>, vector<8x32xbf16>, vector<32x32xf32> -> vector<32x32xf32>
    %136 = arith.addf %92, %135 : vector<32x32xf32>
    %c3 = arith.constant 3 : index
    %c0_72 = arith.constant 0 : index
    %c0_73 = arith.constant 0 : index
    %137 = vector.load %arg2[%c3, %c0_72, %c0_73] : memref<4x32x8xbf16, #tpu.memory_space<vmem>>, vector<1x32x8xbf16>
    %138 = vector.shape_cast %137 : vector<1x32x8xbf16> to vector<32x8xbf16>
    %cst_74 = arith.constant dense<0.000000e+00> : vector<32x8xf32>
    %139 = tpu.matmul %2, %138, %cst_74 {dimension_numbers = #tpu.dot_dimension_numbers<[1], [0], [0], [1], [0, 0, 1, 1], [], []>} : vector<32x32xbf16>, vector<32x8xbf16>, vector<32x8xf32> -> vector<32x8xf32>
    %c3_75 = arith.constant 3 : index
    %c0_76 = arith.constant 0 : index
    %c0_77 = arith.constant 0 : index
    %140 = vector.load %arg3[%c3_75, %c0_76, %c0_77] : memref<4x32x8xbf16, #tpu.memory_space<vmem>>, vector<1x32x8xbf16>
    %141 = vector.shape_cast %140 : vector<1x32x8xbf16> to vector<32x8xbf16>
    %cst_78 = arith.constant dense<0.000000e+00> : vector<32x8xf32>
    %142 = tpu.matmul %2, %141, %cst_78 {dimension_numbers = #tpu.dot_dimension_numbers<[1], [0], [0], [1], [0, 0, 1, 1], [], []>} : vector<32x32xbf16>, vector<32x8xbf16>, vector<32x8xf32> -> vector<32x8xf32>
    %c3_79 = arith.constant 3 : index
    %c0_80 = arith.constant 0 : index
    %c0_81 = arith.constant 0 : index
    %143 = vector.load %arg4[%c3_79, %c0_80, %c0_81] : memref<4x32x8xbf16, #tpu.memory_space<vmem>>, vector<1x32x8xbf16>
    %144 = vector.shape_cast %143 : vector<1x32x8xbf16> to vector<32x8xbf16>
    %cst_82 = arith.constant dense<0.000000e+00> : vector<32x8xf32>
    %145 = tpu.matmul %2, %144, %cst_82 {dimension_numbers = #tpu.dot_dimension_numbers<[1], [0], [0], [1], [0, 0, 1, 1], [], []>} : vector<32x32xbf16>, vector<32x8xbf16>, vector<32x8xf32> -> vector<32x8xf32>
    %146 = vector.shape_cast %139 : vector<32x8xf32> to vector<4x8x8xf32>
    %147 = arith.truncf %146 : vector<4x8x8xf32> to vector<4x8x8xbf16>
    %148 = vector.shape_cast %142 : vector<32x8xf32> to vector<4x8x8xf32>
    %149 = arith.truncf %148 : vector<4x8x8xf32> to vector<4x8x8xbf16>
    %150 = vector.shape_cast %145 : vector<32x8xf32> to vector<4x8x8xf32>
    %151 = arith.truncf %150 : vector<4x8x8xf32> to vector<4x8x8xbf16>
    "tpu.trace_start"() <{level = 10 : i32, message = "blc,bmc->blm"}> : () -> ()
    %cst_83 = arith.constant dense<0.000000e+00> : vector<4x8x8xf32>
    %152 = tpu.matmul %147, %149, %cst_83 {dimension_numbers = #tpu.dot_dimension_numbers<[2], [2], [1], [1], [0, 0, 0, 1, 1, 1], [0], [0]>} : vector<4x8x8xbf16>, vector<4x8x8xbf16>, vector<4x8x8xf32> -> vector<4x8x8xf32>
    "tpu.trace_stop"() : () -> ()
    %c3_84 = arith.constant 3 : index
    %c0_85 = arith.constant 0 : index
    %c0_86 = arith.constant 0 : index
    %153 = vector.load %arg5[%c3_84, %c0_85, %c0_86] : memref<4x8x8xf32, #tpu.memory_space<vmem>>, vector<1x8x8xf32>
    %154 = vector.shape_cast %153 : vector<1x8x8xf32> to vector<8x8xf32>
    %155 = vector.shape_cast %154 : vector<8x8xf32> to vector<1x8x8xf32>
    %156 = vector.broadcast %155 : vector<1x8x8xf32> to vector<4x8x8xf32>
    %157 = arith.addf %152, %156 : vector<4x8x8xf32>
    %158 = vector.shape_cast %157 : vector<4x8x8xf32> to vector<2x2x8x8xf32>
    %159 = vector.shape_cast %3 : vector<2x8x8xf32> to vector<1x2x8x8xf32>
    %160 = vector.broadcast %159 : vector<1x2x8x8xf32> to vector<2x2x8x8xf32>
    %161 = arith.addf %158, %160 : vector<2x2x8x8xf32>
    %162 = vector.shape_cast %161 : vector<2x2x8x8xf32> to vector<4x8x8xf32>
    %cst_87 = arith.constant dense<0xFF800000> : vector<4x8xf32>
    %163 = vector.multi_reduction <maximumf>, %162, %cst_87 [2] : vector<4x8x8xf32> to vector<4x8xf32>
    %164 = vector.shape_cast %163 : vector<4x8xf32> to vector<4x8x1xf32>
    %165 = vector.broadcast %164 : vector<4x8x1xf32> to vector<4x8x8xf32>
    %166 = arith.subf %162, %165 : vector<4x8x8xf32>
    %167 = math.exp %166 : vector<4x8x8xf32>
    %cst_88 = arith.constant dense<0.000000e+00> : vector<4x8xf32>
    %168 = vector.multi_reduction <add>, %167, %cst_88 [2] : vector<4x8x8xf32> to vector<4x8xf32>
    %169 = vector.shape_cast %168 : vector<4x8xf32> to vector<4x8x1xf32>
    %170 = tpu.reciprocal %169 {approx = true} : vector<4x8x1xf32> -> vector<4x8x1xf32>
    %171 = vector.broadcast %170 : vector<4x8x1xf32> to vector<4x8x8xf32>
    %172 = arith.mulf %167, %171 : vector<4x8x8xf32>
    %173 = arith.truncf %172 : vector<4x8x8xf32> to vector<4x8x8xbf16>
    "tpu.trace_start"() <{level = 10 : i32, message = "blm,bmc->blc"}> : () -> ()
    %cst_89 = arith.constant dense<0.000000e+00> : vector<4x8x8xf32>
    %174 = tpu.matmul %173, %151, %cst_89 {dimension_numbers = #tpu.dot_dimension_numbers<[2], [1], [1], [2], [0, 0, 0, 1, 1, 2], [0], [0]>} : vector<4x8x8xbf16>, vector<4x8x8xbf16>, vector<4x8x8xf32> -> vector<4x8x8xf32>
    "tpu.trace_stop"() : () -> ()
    %175 = vector.shape_cast %174 : vector<4x8x8xf32> to vector<32x8xf32>
    %176 = arith.truncf %175 : vector<32x8xf32> to vector<32x8xbf16>
    %c3_90 = arith.constant 3 : index
    %c0_91 = arith.constant 0 : index
    %c0_92 = arith.constant 0 : index
    %177 = vector.load %arg7[%c3_90, %c0_91, %c0_92] : memref<4x8x32xbf16, #tpu.memory_space<vmem>>, vector<1x8x32xbf16>
    %178 = vector.shape_cast %177 : vector<1x8x32xbf16> to vector<8x32xbf16>
    %cst_93 = arith.constant dense<0.000000e+00> : vector<32x32xf32>
    %179 = tpu.matmul %176, %178, %cst_93 {dimension_numbers = #tpu.dot_dimension_numbers<[1], [0], [0], [1], [0, 0, 1, 1], [], []>} : vector<32x8xbf16>, vector<8x32xbf16>, vector<32x32xf32> -> vector<32x32xf32>
    %180 = arith.addf %136, %179 : vector<32x32xf32>
    %c0_94 = arith.constant 0 : index
    %c0_95 = arith.constant 0 : index
    %181 = vector.load %arg8[%c0_94, %c0_95] : memref<1x32xf32, #tpu.memory_space<vmem>>, vector<1x32xf32>
    %182 = vector.broadcast %181 : vector<1x32xf32> to vector<32x32xf32>
    %183 = arith.addf %180, %182 : vector<32x32xf32>
    %184 = vector.shape_cast %183 : vector<32x32xf32> to vector<4x8x32xf32>
    %c0_96 = arith.constant 0 : index
    %c0_97 = arith.constant 0 : index
    %c0_98 = arith.constant 0 : index
    %185 = vector.load %arg9[%c0_96, %c0_97, %c0_98] : memref<4x8x32xf32, #tpu.memory_space<vmem>>, vector<4x8x32xf32>
    tpu.vector_store %arg9[%c0_96, %c0_97, %c0_98], %184 {strides = array<i32>} : memref<4x8x32xf32, #tpu.memory_space<vmem>>, vector<4x8x32xf32>,
    return
  }
  func.func @transform_0(%arg0: i32) -> (i32, i32, i32) {
    %c0_i32 = arith.constant 0 : i32
    %c0_i32_0 = arith.constant 0 : i32
    %c0_i32_1 = arith.constant 0 : i32
    return %arg0, %c0_i32, %c0_i32_0 : i32, i32, i32
  }
  func.func @transform_1(%arg0: i32) -> (i32, i32, i32) {
    %c0_i32 = arith.constant 0 : i32
    %c0_i32_0 = arith.constant 0 : i32
    %c0_i32_1 = arith.constant 0 : i32
    %c0_i32_2 = arith.constant 0 : i32
    return %c0_i32, %c0_i32_0, %c0_i32_1 : i32, i32, i32
  }
  func.func @transform_2(%arg0: i32) -> (i32, i32, i32) {
    %c0_i32 = arith.constant 0 : i32
    %c0_i32_0 = arith.constant 0 : i32
    %c0_i32_1 = arith.constant 0 : i32
    %c0_i32_2 = arith.constant 0 : i32
    return %c0_i32, %c0_i32_0, %c0_i32_1 : i32, i32, i32
  }
  func.func @transform_3(%arg0: i32) -> (i32, i32, i32) {
    %c0_i32 = arith.constant 0 : i32
    %c0_i32_0 = arith.constant 0 : i32
    %c0_i32_1 = arith.constant 0 : i32
    %c0_i32_2 = arith.constant 0 : i32
    return %c0_i32, %c0_i32_0, %c0_i32_1 : i32, i32, i32
  }
  func.func @transform_4(%arg0: i32) -> (i32, i32, i32) {
    %c0_i32 = arith.constant 0 : i32
    %c0_i32_0 = arith.constant 0 : i32
    %c0_i32_1 = arith.constant 0 : i32
    %c0_i32_2 = arith.constant 0 : i32
    return %c0_i32, %c0_i32_0, %c0_i32_1 : i32, i32, i32
  }
  func.func @transform_5(%arg0: i32) -> (i32, i32, i32) {
    %c0_i32 = arith.constant 0 : i32
    %c0_i32_0 = arith.constant 0 : i32
    %c0_i32_1 = arith.constant 0 : i32
    %c0_i32_2 = arith.constant 0 : i32
    return %c0_i32, %c0_i32_0, %c0_i32_1 : i32, i32, i32
  }
  func.func @transform_6(%arg0: i32) -> (i32, i32, i32) {
    %c0_i32 = arith.constant 0 : i32
    %c0_i32_0 = arith.constant 0 : i32
    %c0_i32_1 = arith.constant 0 : i32
    %c0_i32_2 = arith.constant 0 : i32
    return %c0_i32, %c0_i32_0, %c0_i32_1 : i32, i32, i32
  }
  func.func @transform_7(%arg0: i32) -> (i32, i32) {
    %c0_i32 = arith.constant 0 : i32
    %c0_i32_0 = arith.constant 0 : i32
    %c0_i32_1 = arith.constant 0 : i32
    return %c0_i32, %c0_i32_0 : i32, i32
  }
  func.func @transform_8(%arg0: i32) -> (i32, i32, i32) {
    %c0_i32 = arith.constant 0 : i32
    %c0_i32_0 = arith.constant 0 : i32
    %c0_i32_1 = arith.constant 0 : i32
    return %arg0, %c0_i32, %c0_i32_0 : i32, i32, i32
  }
}

</mosaic_0001>

<bundles_post_ra>
// kernel: tpu_custom_call.1
= control target key start
LH: loop header
LB: loop body
LE: loop exit
PB: predicated region body
PF: predicated region fallthrough
CT: control target
= control target key end

     0   :  { %13 = vsyncpa [#allocation3], 0  ;;  %s4362_s0 = inlined_call_operand.hbm [shape: f32[4,8,32], index: 0, kind: input, shape index: {}]   ;;  %s4363_s1 = inlined_call_operand.hbm [shape: bf16[4,32,8], index: 1, kind: input, shape index: {}]   ;;  %s4364_s2 = inlined_call_operand.hbm [shape: bf16[4,32,8], index: 2, kind: input, shape index: {}]   ;;  %s4365_s3 = inlined_call_operand.hbm [shape: bf16[4,32,8], index: 3, kind: input, shape index: {}]   ;;  %s4366_s4 = inlined_call_operand.hbm [shape: f32[4,8,8], index: 4, kind: input, shape index: {}]   ;;  %s4367_s5 = inlined_call_operand.hbm [shape: f32[2,8,8], index: 5, kind: input, shape index: {}]   ;;  %s4368_s6 = inlined_call_operand.hbm [shape: bf16[4,8,32], index: 6, kind: input, shape index: {}]   ;;  %s4369_s7 = inlined_call_operand.hbm [shape: f32[1,32], index: 7, kind: input, shape index: {}]   ;;  %s4370_s8 = inlined_call_operand.hbm [shape: f32[4,8,32], index: 8, kind: output, shape index: {}]  }
   0x1   :  { %14 = vsyncpa [#allocation6], 0 }
   0x2   :  { %15 = vsyncpa [#allocation9], 0 }
   0x3   :  { %16 = vsyncpa [#allocation12], 0 }
   0x4   :  { %17 = vsyncpa [#allocation15], 0 }
   0x5   :  { %18 = vsyncpa [#allocation4], 0  ;;  %s3826_s27 = smov [#allocation5]   ;;  %s3616_s9 = scalar_lea.hbm %s4363_s1, 1024 }
   0x6   :  { %s36_s28 = sshll.u32 %s3826_s27, 4  ;;  %p3617_p0 = scmp.ne.s32.totalorder %s4363_s1, %s3616_s9  ;;  %s37_s28 = int_to_ptr.vmem [resolvable:$true] %s36_s28 }
   0x7   :  { %p3620_p1 = scmp.lt.u32.totalorder %s3616_s9, %s4363_s1 }
   0x9   :  { %p3622_p2 = pnand %p3620_p1, %p3617_p0 }
   0xb   :  { %3625 = shalt.err (!%p3622_p2)
}
   0xc   :  { %s3626_s14 = scalar_lea.vmem %s37_s28, 1024  ;;  %p3631_p4 = scmp.lt.s32.totalorder %s37_s28, %s37_s28 }
   0xd   :  { %p3627_p3 = scmp.ne.s32.totalorder %s37_s28, %s3626_s14  ;;  %p3632_p5 = scmp.lt.s32.totalorder %s3626_s14, %s3626_s14 }
   0xf   :  { %p3633_p6 = por %p3632_p5, %p3631_p4 }
  0x11   :  { %p3634_p7 = pnand %p3633_p6, %p3627_p3 }
  0x13   :  { %3637 = shalt.err (!%p3634_p7)
}
  0x14   :  { %s3827_s15 = smov 64   ;;  %s3828_s16 = smov 4  }
  0x15   :  { %42 = dma.hbm_to_vmem [thread:$0]  %s4363_s1, 1024, %s37_s28, [#allocation6], %s3827_s15, %s3827_s15, %s3828_s16  }
  0x16   :  { %s3829_s19 = smov [#allocation8]   ;;  %s3638_s23 = scalar_lea.hbm %s4365_s3, 1024 }
  0x17   :  { %s60_s20 = sshll.u32 %s3829_s19, 4  ;;  %p3639_p8 = scmp.ne.s32.totalorder %s4365_s3, %s3638_s23  ;;  %s61_s20 = int_to_ptr.vmem [resolvable:$true] %s60_s20 }
  0x18   :  { %p3642_p9 = scmp.lt.u32.totalorder %s3638_s23, %s4365_s3 }
  0x1a   :  { %p3644_p10 = pnand %p3642_p9, %p3639_p8 }
  0x1c   :  { %3647 = shalt.err (!%p3644_p10)
}
  0x1d   :  { %s3648_s29 = scalar_lea.vmem %s61_s20, 1024  ;;  %p3653_p12 = scmp.lt.s32.totalorder %s61_s20, %s61_s20 }
  0x1e   :  { %p3649_p11 = scmp.ne.s32.totalorder %s61_s20, %s3648_s29  ;;  %p3654_p13 = scmp.lt.s32.totalorder %s3648_s29, %s3648_s29 }
  0x20   :  { %p3655_p0 = por %p3654_p13, %p3653_p12 }
  0x22   :  { %p3656_p1 = pnand %p3655_p0, %p3649_p11 }
  0x24   :  { %3659 = shalt.err (!%p3656_p1)
}
  0x25   :  { %66 = dma.hbm_to_vmem [thread:$0]  %s4365_s3, 1024, %s61_s20, [#allocation9], %s3827_s15, %s3827_s15, %s3828_s16  }
  0x26   :  { %s3830_s30 = smov [#allocation11]   ;;  %s3831_s10 = smov [#allocation2]  }
  0x27   :  { %s84_s9 = sshll.u32 %s3830_s30, 4  ;;  %s24_s11 = sshll.u32 %s3831_s10, 4  ;;  %s85_s9 = int_to_ptr.vmem [resolvable:$true] %s84_s9  ;;  %s3916_s11 = int_to_ptr.vmem [resolvable:$true] %s24_s11 }
  0x28   :  { %s3660_s14 = scalar_lea.hbm %s4367_s5, 256 }
  0x29   :  { %p3661_p2 = scmp.ne.s32.totalorder %s4367_s5, %s3660_s14  ;;  %p3664_p3 = scmp.lt.u32.totalorder %s3660_s14, %s4367_s5 }
  0x2b   :  { %p3666_p4 = pnand %p3664_p3, %p3661_p2 }
  0x2d   :  { %3669 = shalt.err (!%p3666_p4)
}
  0x2e   :  { %s3670_s3 = scalar_lea.vmem %s85_s9, 256  ;;  %p3675_p6 = scmp.lt.s32.totalorder %s85_s9, %s85_s9 }
  0x2f   :  { %p3671_p5 = scmp.ne.s32.totalorder %s85_s9, %s3670_s3  ;;  %p3676_p7 = scmp.lt.s32.totalorder %s3670_s3, %s3670_s3 }
  0x31   :  { %p3677_p8 = por %p3676_p7, %p3675_p6 }
  0x33   :  { %p3678_p9 = pnand %p3677_p8, %p3671_p5 }
  0x35   :  { %3681 = shalt.err (!%p3678_p9)
}
  0x36   :  { %s3832_s20 = smov 128   ;;  %s3833_s22 = smov 8  }
  0x37   :  { %90 = dma.hbm_to_vmem [thread:$0]  %s4367_s5, 256, %s85_s9, [#allocation12], %s3832_s20, %s3832_s20, %s3833_s22  }
  0x38   :  { %s3682_s27 = scalar_lea.hbm %s4362_s0, 512 }
  0x39   :  { %p3683_p10 = scmp.ne.s32.totalorder %s4362_s0, %s3682_s27  ;;  %p3686_p11 = scmp.lt.u32.totalorder %s3682_s27, %s4362_s0 }
  0x3b   :  { %p3688_p12 = pnand %p3686_p11, %p3683_p10 }
  0x3d   :  { %3691 = shalt.err (!%p3688_p12)
}
  0x3e   :  { %s3692_s10 = scalar_lea.vmem %s3916_s11, 512  ;;  %p3697_p0 = scmp.lt.s32.totalorder %s3916_s11, %s3916_s11 }
  0x3f   :  { %p3693_p13 = scmp.ne.s32.totalorder %s3916_s11, %s3692_s10  ;;  %p3698_p1 = scmp.lt.s32.totalorder %s3692_s10, %s3692_s10 }
  0x41   :  { %p3699_p2 = por %p3698_p1, %p3697_p0 }
  0x43   :  { %p3700_p3 = pnand %p3699_p2, %p3693_p13 }
  0x45   :  { %3703 = shalt.err (!%p3700_p3)
}
  0x46   :  { %30 = dma.hbm_to_vmem [thread:$0]  %s4362_s0, 512, %s3916_s11, [#allocation3], %s3832_s20, %s3832_s20, %s3833_s22  }
  0x47   :  { %s3834_s12 = smov [#allocation7]   ;;  %s3835_s14 = smov [#allocation10]  }
  0x48   :  { %s48_s13 = sshll.u32 %s3834_s12, 4  ;;  %s72_s17 = sshll.u32 %s3835_s14, 4  ;;  %s49_s13 = int_to_ptr.vmem [resolvable:$true] %s48_s13  ;;  %s3953_s17 = int_to_ptr.vmem [resolvable:$true] %s72_s17 }
  0x49   :  { %s3704_s21 = scalar_lea.hbm %s4364_s2, 1024 }
  0x4a   :  { %p3705_p4 = scmp.ne.s32.totalorder %s4364_s2, %s3704_s21  ;;  %p3708_p5 = scmp.lt.u32.totalorder %s3704_s21, %s4364_s2 }
  0x4c   :  { %p3710_p6 = pnand %p3708_p5, %p3705_p4 }
  0x4e   :  { %3713 = shalt.err (!%p3710_p6)
}
  0x4f   :  { %s3714_s0 = scalar_lea.vmem %s49_s13, 1024  ;;  %p3719_p8 = scmp.lt.s32.totalorder %s49_s13, %s49_s13 }
  0x50   :  { %p3715_p7 = scmp.ne.s32.totalorder %s49_s13, %s3714_s0  ;;  %p3720_p9 = scmp.lt.s32.totalorder %s3714_s0, %s3714_s0 }
  0x52   :  { %p3721_p10 = por %p3720_p9, %p3719_p8 }
  0x54   :  { %p3722_p11 = pnand %p3721_p10, %p3715_p7 }
  0x56   :  { %3725 = shalt.err (!%p3722_p11)
}
  0x57   :  { %54 = dma.hbm_to_vmem [thread:$0]  %s4364_s2, 1024, %s49_s13, [#allocation6], %s3827_s15, %s3827_s15, %s3828_s16  }
  0x58   :  { %s3726_s1 = scalar_lea.hbm %s4366_s4, 512 }
  0x59   :  { %p3727_p12 = scmp.ne.s32.totalorder %s4366_s4, %s3726_s1  ;;  %p3730_p13 = scmp.lt.u32.totalorder %s3726_s1, %s4366_s4 }
  0x5b   :  { %p3732_p0 = pnand %p3730_p13, %p3727_p12 }
  0x5d   :  { %3735 = shalt.err (!%p3732_p0)
}
  0x5e   :  { %s3736_s9 = scalar_lea.vmem %s3953_s17, 512  ;;  %p3741_p2 = scmp.lt.s32.totalorder %s3953_s17, %s3953_s17 }
  0x5f   :  { %p3737_p1 = scmp.ne.s32.totalorder %s3953_s17, %s3736_s9  ;;  %p3742_p3 = scmp.lt.s32.totalorder %s3736_s9, %s3736_s9 }
  0x61   :  { %p3743_p4 = por %p3742_p3, %p3741_p2 }
  0x63   :  { %p3744_p5 = pnand %p3743_p4, %p3737_p1 }
  0x65   :  { %3747 = shalt.err (!%p3744_p5)
}
  0x66   :  { %78 = dma.hbm_to_vmem [thread:$0]  %s4366_s4, 512, %s3953_s17, [#allocation9], %s3832_s20, %s3832_s20, %s3833_s22  }
  0x67   :  { %s3836_s13 = smov [#allocation13]   ;;  %s3837_s18 = smov [#allocation14]  }
  0x68   :  { %s96_s14 = sshll.u32 %s3836_s13, 4  ;;  %s109_s19 = sshll.u32 %s3837_s18, 4  ;;  %s97_s14 = int_to_ptr.vmem [resolvable:$true] %s96_s14  ;;  %s110_s19 = int_to_ptr.vmem [resolvable:$true] %s109_s19 }
  0x69   :  { %s3748_s23 = scalar_lea.hbm %s4368_s6, 256 }
  0x6a   :  { %p3749_p6 = scmp.ne.s32.totalorder %s4368_s6, %s3748_s23  ;;  %p3752_p7 = scmp.lt.u32.totalorder %s3748_s23, %s4368_s6 }
  0x6c   :  { %p3754_p8 = pnand %p3752_p7, %p3749_p6 }
  0x6e   :  { %3757 = shalt.err (!%p3754_p8)
}
  0x6f   :  { %s3758_s4 = scalar_lea.vmem %s97_s14, 256  ;;  %p3763_p10 = scmp.lt.s32.totalorder %s97_s14, %s97_s14 }
  0x70   :  { %p3759_p9 = scmp.ne.s32.totalorder %s97_s14, %s3758_s4  ;;  %p3764_p11 = scmp.lt.s32.totalorder %s3758_s4, %s3758_s4 }
  0x72   :  { %p3765_p12 = por %p3764_p11, %p3763_p10 }
  0x74   :  { %p3766_p13 = pnand %p3765_p12, %p3759_p9 }
  0x76   :  { %3769 = shalt.err (!%p3766_p13)
}
  0x77   :  { %102 = dma.hbm_to_vmem [thread:$0]  %s4368_s6, 256, %s97_s14, [#allocation12], %s3827_s15, %s3827_s15, %s3828_s16  }
  0x78   :  { %s3770_s1 = scalar_lea.hbm %s4369_s7, 16 }
  0x79   :  { %p3771_p0 = scmp.ne.s32.totalorder %s4369_s7, %s3770_s1  ;;  %p3774_p1 = scmp.lt.u32.totalorder %s3770_s1, %s4369_s7 }
  0x7b   :  { %p3776_p2 = pnand %p3774_p1, %p3771_p0 }
  0x7d   :  { %3779 = shalt.err (!%p3776_p2)
}
  0x7e   :  { %s3780_s9 = scalar_lea.vmem %s110_s19, 16  ;;  %s3784_s2 = scalar_lea.vmem %s110_s19, 32 }
  0x7f   :  { %p3781_p3 = scmp.ne.s32.totalorder %s110_s19, %s3780_s9  ;;  %p3785_p4 = scmp.lt.s32.totalorder %s110_s19, %s110_s19 }
  0x80   :  { %p3786_p5 = scmp.lt.s32.totalorder %s3784_s2, %s3780_s9 }
  0x82   :  { %p3787_p6 = por %p3786_p5, %p3785_p4 }
  0x84   :  { %p3788_p7 = pnand %p3787_p6, %p3781_p3 }
  0x86   :  { %3791 = shalt.err (!%p3788_p7)
}
  0x87   :  { %112 = dma.hbm_to_vmem [thread:$0]  %s4369_s7, 16, %s110_s19, [#allocation15]  }
  0x88   :  { %3814 = dma.done.wait [#allocation3], 512  }
  0x89   :  { %3815 = vsyncadd [#allocation3], 4294966784 }
  0x8a   :  { %3816 = dma.done.wait [#allocation6], 2048  }
  0x8b   :  { %3817 = vsyncadd [#allocation6], 4294965248 }
  0x8c   :  { %3818 = dma.done.wait [#allocation9], 1536  }
  0x8d   :  { %3819 = vsyncadd [#allocation9], 4294965760 }
  0x8e   :  { %3820 = dma.done.wait [#allocation12], 512  }
  0x8f   :  { %3821 = vsyncadd [#allocation12], 4294966784 }
  0x90   :  { %3822 = dma.done.wait [#allocation15], 16  }
  0x91   :  { %3823 = vsyncadd [#allocation15], 4294967280  ;;  %v3526_v0 = vld [vmem:[#allocation5] sm:$0xff]   ;;  %v3527_v1 = vld [vmem:[#allocation5 + $0x8] sm:$0xff]   ;;  %vm162_vm0 = vcmask 261120   ;;  %v3838_v12 = vmov 0.0  }
  0x92   :  { %3183 = vmatprep.subr.bf16.mxu1 %v3526_v0  ;;  %v138_v2 = vld [vmem:[#allocation2] sm:$0xff]  ;;  %v139_v3 = vld [vmem:[#allocation2 + $0x8] sm:$0xff]  ;;  %v140_v4 = vld [vmem:[#allocation2 + $0x10] sm:$0xff]  ;;  %vm3839_vm1 = vmmov 0   ;;  %vm361_vm2 = vcmask 64512   ;;  %vm601_vm3 = vcmask 1043456  }
  0x93   :  { %3184 = vmatpush3.bf16.msra.mxu1 %v3526_v0  ;;  %v4017_v5 = vpack.c.bf16 %v139_v3, %v138_v2  ;;  %v141_v6 = vld [vmem:[#allocation2 + $0x18] sm:$0xff]  ;;  %v3528_v7 = vld [vmem:[#allocation7] sm:$0xff]   ;;  %v3529_v9 = vld [vmem:[#allocation7 + $0x8] sm:$0xff]   ;;  %s3840_s7 = smov [#allocation16]  }
  0x94   :  { %3185 = vmatprep.subr.bf16.mxu1 %v3527_v1  ;;  %v4023_v8 = vpack.c.bf16 %v141_v6, %v140_v4  ;;  %v3530_v10 = vld [vmem:[#allocation8] sm:$0xff]   ;;  %v3531_v11 = vld [vmem:[#allocation8 + $0x8] sm:$0xff]   ;;  %s2954_s16 = sshll.u32 %s3840_s7, 4  ;;  %s2955_s16 = int_to_ptr.vmem [resolvable:$true] %s2954_s16 }
  0x95   :  { %3187 = vmatprep.mubr.msk.bf16.mxu1 %vm162_vm0, %v4017_v5  ;;  %3203 = vmatprep.mubr.msk.bf16.mxu0 %vm162_vm0, %v4017_v5  ;;  %v360_v41 = vld [vmem:[#allocation10] sm:$0xff]  ;;  %v4067_v46 = vld [vmem:[#allocation11 + $0x8] sm:$0xff]  ;;  %s3792_s12 = scalar_lea.vmem %s2955_s16, 512  ;;  %p3797_p9 = scmp.lt.s32.totalorder %s2955_s16, %s2955_s16 }
  0x96   :  { %3199 = vmatprep.subr.bf16.mxu0 %v3530_v10  ;;  %v4069_v52 = vld [vmem:[#allocation11] sm:$0xff]  ;;  %p3793_p8 = scmp.ne.s32.totalorder %s2955_s16, %s3792_s12  ;;  %p3798_p10 = scmp.lt.s32.totalorder %s3792_s12, %s3792_s12 }
  0x97   :  { %3186 = vmatpush3.bf16.msra.mxu1 %v3527_v1  ;;  %3200 = vmatpush3.bf16.msra.mxu0 %v3530_v10 }
  0x98   :  { %3191 = vmatprep.subr.bf16.mxu1 %v3528_v7  ;;  %3201 = vmatprep.subr.bf16.mxu0 %v3531_v11  ;;  %p3799_p11 = por %p3798_p10, %p3797_p9 }
  0x9a   :  { %3188 = vmatmul.mubr.msk.bf16.vlgmr.msra.gmra.mrb[0].mxu1 %vm162_vm0, %v4023_v8  ;;  %p3800_p12 = pnand %p3799_p11, %p3793_p8 }
  0x9b   :  { %3192 = vmatpush3.bf16.msra.mxu1 %v3528_v7  ;;  %3195 = vmatprep.mubr.msk.bf16.mxu1 %vm162_vm0, %v4017_v5 }
  0x9c   :  { %3193 = vmatprep.subr.bf16.mxu1 %v3529_v9  ;;  %3202 = vmatpush3.bf16.msra.mxu0 %v3531_v11 }
  0x9d   :  { %3213 = vmatprep.subr.bf16.mxu0 %v3838_v12 }
  0x9f   :  { %3194 = vmatpush3.bf16.msra.mxu1 %v3529_v9  ;;  %3204 = vmatmul.mubr.msk.bf16.vlgmr.msra.gmra.mrb[0].mxu0 %vm162_vm0, %v4023_v8 }
  0xa0   :  { %3207 = vmatprep.subr.bf16.mxu1 %v3838_v12  ;;  %3215 = vmatprep.mubr.msk.bf16.mxu0 %vm3839_vm1, %v3838_v12 }
  0xa2   :  { %3196 = vmatmul.mubr.msk.bf16.vlgmr.msra.gmra.mrb[4].mxu1 %vm162_vm0, %v4023_v8 }
  0xa3   :  { %3209 = vmatprep.mubr.msk.bf16.mxu1 %vm3839_vm1, %v3838_v12 }
 0x16d   :  { %v3189_v13 = vpop.f32.mrb[0].mxu1 }
 0x16e   :  { %v203_v14 = vpop.f32.mrb[1].mxu1  ;;  %v350_v31 = vpack.c.bf16 %v3189_v13, %v3189_v13 }
 0x16f   :  { %v3190_v15 = vpop.f32.mrb[2].mxu1  ;;  %v348_v26 = vpack.c.bf16 %v203_v14, %v203_v14 }
 0x170   :  { %v206_v16 = vpop.f32.mrb[3].mxu1  ;;  %v351_v32 = vpack.c.bf16 %v3190_v15, %v3190_v15 }
 0x171   :  { %v349_v28 = vpack.c.bf16 %v206_v16, %v206_v16 }
 0x172   :  { %v4059_v33 = vpop.f32.mrb[0].mxu0 }
 0x173   :  { %v333_v34 = vpop.f32.mrb[1].mxu0 }
 0x174   :  { %v356_v35 = vpack.c.bf16 %v333_v34, %v333_v34  ;;  %v4061_v36 = vpop.f32.mrb[2].mxu0 }
 0x175   :  { %v3197_v17 = vpop.f32.mrb[4].mxu1  ;;  %v336_v37 = vpop.f32.mrb[3].mxu0 }
 0x176   :  { %v268_v18 = vpop.f32.mrb[5].mxu1  ;;  %v354_v25 = vpack.c.bf16 %v3197_v17, %v3197_v17  ;;  %v603_v38 = vsel %vm601_vm3, %v356_v35, 0  ;;  %v357_v39 = vpack.c.bf16 %v336_v37, %v336_v37  ;;  %v359_v37 = vpack.c.bf16 %v4061_v36, %v4061_v36  ;;  %v3534_v36 = vld [vmem:[#allocation5 + $0x10] sm:$0xff]  }
 0x177   :  { %v352_v19 = vpack.c.bf16 %v268_v18, %v268_v18  ;;  %v3198_v20 = vpop.f32.mrb[6].mxu1 }
 0x178   :  { %v271_v21 = vpop.f32.mrb[7].mxu1  ;;  %v355_v27 = vpack.c.bf16 %v3198_v20, %v3198_v20  ;;  %v458_v29 = vsel %vm361_vm2, %v354_v25, 0  ;;  %v649_v40 = vsel %vm601_vm3, %v357_v39, 0 }
 0x179   :  { %v366_v22 = vsel %vm361_vm2, %v352_v19, 0  ;;  %v353_v23 = vpack.c.bf16 %v271_v21, %v271_v21 }
 0x17a   :  { %3208 = vmatpush3.bf16.xpose.msra.mxu1 %v366_v22  ;;  %v504_v30 = vsel %vm361_vm2, %v355_v27, 0 }
 0x17b   :  { %v412_v24 = vsel %vm361_vm2, %v353_v23, 0  ;;  %3219 = vmatprep.subr.bf16.mxu1 %v3838_v12 }
 0x17c   :  { %3214 = vmatpush3.bf16.xpose.msra.mxu0 %v412_v24 }
 0x17d   :  { %3225 = vmatprep.subr.bf16.mxu0 %v3838_v12 }
 0x181   :  { %3210 = vmatmul.mubr.msk.bf16.vlgmr.msra.gmra.mrb[8].mxu1 %vm361_vm2, %v348_v26 }
 0x182   :  { %3220 = vmatpush3.bf16.xpose.msra.mxu1 %v458_v29  ;;  %3221 = vmatprep.mubr.msk.bf16.mxu1 %vm3839_vm1, %v3838_v12 }
 0x183   :  { %3216 = vmatmul.mubr.msk.bf16.vlgmr.msra.gmra.mrb[4].mxu0 %vm361_vm2, %v349_v28  ;;  %3231 = vmatprep.subr.bf16.mxu1 %v3838_v12 }
 0x184   :  { %3226 = vmatpush3.bf16.xpose.msra.mxu0 %v504_v30  ;;  %3227 = vmatprep.mubr.msk.bf16.mxu0 %vm3839_vm1, %v3838_v12 }
 0x185   :  { %3237 = vmatprep.subr.bf16.mxu0 %v3838_v12 }
 0x189   :  { %3222 = vmatmul.mubr.msk.bf16.vlgmr.msra.gmra.mrb[12].mxu1 %vm361_vm2, %v350_v31 }
 0x18a   :  { %3233 = vmatprep.mubr.msk.bf16.mxu1 %vm3839_vm1, %v3838_v12  ;;  %3232 = vmatpush3.bf16.msra.mxu1 %v603_v38 }
 0x18b   :  { %3228 = vmatmul.mubr.msk.bf16.vlgmr.msra.gmra.mrb[8].mxu0 %vm361_vm2, %v351_v32  ;;  %3243 = vmatprep.subr.bf16.mxu1 %v3838_v12 }
 0x18c   :  { %3239 = vmatprep.mubr.msk.bf16.mxu0 %vm3839_vm1, %v3838_v12  ;;  %3238 = vmatpush3.bf16.msra.mxu0 %v649_v40 }
 0x18d   :  { %3249 = vmatprep.subr.bf16.mxu0 %v3838_v12 }
 0x254   :  { %v402_v42 = vpop.f32.mrb[8].mxu1 }
 0x255   :  { %v3211_v43 = vpop.f32.mrb[9].mxu1  ;;  %v403_v47 = vadd.f32 %v402_v42, %v360_v41 }
 0x256   :  { %v405_v44 = vpop.f32.mrb[10].mxu1  ;;  %v448_v45 = vpop.f32.mrb[4].mxu0  ;;  %v358_v43 = vpack.c.bf16 %v4059_v33, %v4059_v33 }
 0x257   :  { %v449_v48 = vadd.f32 %v448_v45, %v360_v41  ;;  %v3212_v49 = vpop.f32.mrb[11].mxu1  ;;  %v3217_v50 = vpop.f32.mrb[5].mxu0  ;;  %v546_v56 = vadd.f32 %v403_v47, %v4069_v52  ;;  %v741_v44 = vsel %vm601_vm3, %v359_v37, 0 }
 0x258   :  { %v451_v51 = vpop.f32.mrb[6].mxu0  ;;  %v695_v49 = vsel %vm601_vm3, %v358_v43, 0 }
 0x259   :  { %v3218_v53 = vpop.f32.mrb[7].mxu0  ;;  %v547_v54 = vadd.f32 %v449_v48, %v4067_v46  ;;  %v550_v1 = vsel %vm361_vm2, %v546_v56, -inf  ;;  %v3533_v51 = vld [vmem:[#allocation7 + $0x18] sm:$0xff]  }
 0x25b   :  { %v553_v55 = vsel %vm361_vm2, %v547_v54, -inf }
 0x25c   :  { %v494_v57 = vpop.f32.mrb[12].mxu1  ;;  %554 = vmax.xlane.f32.xlu0 %v553_v55 }
 0x25d   :  { %v3223_v58 = vpop.f32.mrb[13].mxu1  ;;  %v495_v61 = vadd.f32 %v494_v57, %v360_v41  ;;  %v3536_v57 = vld [vmem:[#allocation8 + $0x10] sm:$0xff]  }
 0x25e   :  { %v497_v59 = vpop.f32.mrb[14].mxu1  ;;  %v540_v60 = vpop.f32.mrb[8].mxu0  ;;  %v3537_v58 = vld [vmem:[#allocation8 + $0x18] sm:$0xff]  }
 0x25f   :  { %v541_v62 = vadd.f32 %v540_v60, %v360_v41  ;;  %v3224_v63 = vpop.f32.mrb[15].mxu1  ;;  %v3229_v0 = vpop.f32.mrb[9].mxu0  ;;  %v548_v7 = vadd.f32 %v495_v61, %v4069_v52  ;;  %v3532_v41 = vld [vmem:[#allocation7 + $0x10] sm:$0xff]  }
 0x260   :  { %551 = vmax.xlane.f32.xlu0 %v550_v1  ;;  %v543_v2 = vpop.f32.mrb[10].mxu0 }
 0x261   :  { %v3230_v3 = vpop.f32.mrb[11].mxu0  ;;  %v549_v4 = vadd.f32 %v541_v62, %v4067_v46  ;;  %v556_v9 = vsel %vm361_vm2, %v548_v7, -inf }
 0x263   :  { %v559_v6 = vsel %vm361_vm2, %v549_v4, -inf }
 0x264   :  { %560 = vmax.xlane.f32.xlu1 %v559_v6 }
 0x268   :  { %557 = vmax.xlane.f32.xlu1 %v556_v9 }
 0x2e9   :  { %v555_v10 = vpop.xlane.xlu0 %554 }
 0x2ea   :  { %v563_v11 = vsub.f32 %v547_v54, %v555_v10 }
 0x2ec   :  { %v568_v13 = vmul.f32 1.442695, %v563_v11 }
 0x2ed   :  { %v552_v14 = vpop.xlane.xlu0 %551 }
 0x2ee   :  { %3550 = vpow2.f32 %v568_v13  ;;  %v562_v15 = vsub.f32 %v546_v56, %v552_v14  ;;  %v3535_v56 = vld [vmem:[#allocation5 + $0x18] sm:$0xff]  }
 0x2f0   :  { %v566_v16 = vmul.f32 1.442695, %v562_v15 }
 0x2f1   :  { %v561_v17 = vpop.xlane.xlu1 %560 }
 0x2f2   :  { %3552 = vpow2.f32 %v566_v16  ;;  %v565_v18 = vsub.f32 %v549_v4, %v561_v17 }
 0x2f4   :  { %v572_v19 = vmul.f32 1.442695, %v565_v18 }
 0x2f5   :  { %v558_v20 = vpop.xlane.xlu1 %557 }
 0x2f6   :  { %3554 = vpow2.f32 %v572_v19  ;;  %v564_v21 = vsub.f32 %v548_v7, %v558_v20 }
 0x2f8   :  { %v3551_v22 = vpop.eup %3550  ;;  %v570_v23 = vmul.f32 1.442695, %v564_v21 }
 0x2f9   :  { %v577_v24 = vsel %vm361_vm2, %v3551_v22, 0.0 }
 0x2fa   :  { %3556 = vpow2.f32 %v570_v23  ;;  %578 = vadd.xlane.f32.xlu0 %v577_v24 }
 0x2fc   :  { %v3553_v25 = vpop.eup %3552 }
 0x2fd   :  { %v574_v26 = vsel %vm361_vm2, %v3553_v25, 0.0 }
 0x2fe   :  { %575 = vadd.xlane.f32.xlu1 %v574_v26 }
 0x300   :  { %v3555_v27 = vpop.eup %3554 }
 0x301   :  { %v583_v28 = vsel %vm361_vm2, %v3555_v27, 0.0 }
 0x302   :  { %584 = vadd.xlane.f32.xlu0 %v583_v28 }
 0x304   :  { %v3557_v29 = vpop.eup %3556 }
 0x305   :  { %v580_v30 = vsel %vm361_vm2, %v3557_v29, 0.0 }
 0x306   :  { %581 = vadd.xlane.f32.xlu1 %v580_v30 }
 0x387   :  { %v579_v31 = vpop.xlane.xlu0 %578 }
 0x388   :  { %3558 = vrcp.f32 %v579_v31 }
 0x38b   :  { %v576_v32 = vpop.xlane.xlu1 %575 }
 0x38c   :  { %3560 = vrcp.f32 %v576_v32 }
 0x38f   :  { %v585_v34 = vpop.xlane.xlu0 %584 }
 0x390   :  { %3562 = vrcp.f32 %v585_v34 }
 0x392   :  { %v3559_v35 = vpop.eup %3558 }
 0x393   :  { %v591_v38 = vmul.f32 %v3559_v35, %v3551_v22  ;;  %v582_v39 = vpop.xlane.xlu1 %581 }
 0x394   :  { %3564 = vrcp.f32 %v582_v39 }
 0x395   :  { %v595_v40 = vpack.c.bf16 %v591_v38, %v591_v38 }
 0x396   :  { %v3561_v42 = vpop.eup %3560 }
 0x397   :  { %v590_v45 = vmul.f32 %v3561_v42, %v3553_v25  ;;  %3240 = vmatmul.mubr.msk.bf16.vlgmr.msra.gmra.mrb[12].mxu0 %vm361_vm2, %v595_v40 }
 0x398   :  { %3250 = vmatpush3.bf16.msra.mxu0 %v741_v44  ;;  %3251 = vmatprep.mubr.msk.bf16.mxu0 %vm3839_vm1, %v3838_v12 }
 0x399   :  { %v594_v47 = vpack.c.bf16 %v590_v45, %v590_v45  ;;  %3263 = vmatprep.subr.bf16.mxu0 %v3532_v41 }
 0x39a   :  { %v3563_v48 = vpop.eup %3562 }
 0x39b   :  { %v593_v50 = vmul.f32 %v3563_v48, %v3555_v27  ;;  %3234 = vmatmul.mubr.msk.bf16.vlgmr.msra.gmra.mrb[16].mxu1 %vm361_vm2, %v594_v47  ;;  %v997_v47 = vld [vmem:[#allocation10 + $0x8] sm:$0xff] }
 0x39c   :  { %3244 = vmatpush3.bf16.msra.mxu1 %v695_v49  ;;  %3245 = vmatprep.mubr.msk.bf16.mxu1 %vm3839_vm1, %v3838_v12 }
 0x39d   :  { %v597_v33 = vpack.c.bf16 %v593_v50, %v593_v50  ;;  %3255 = vmatprep.subr.bf16.mxu1 %v3534_v36 }
 0x39e   :  { %v3565_v53 = vpop.eup %3564 }
 0x39f   :  { %v592_v54 = vmul.f32 %v3565_v53, %v3557_v29  ;;  %3252 = vmatmul.mubr.msk.bf16.vlgmr.msra.gmra.mrb[16].mxu0 %vm361_vm2, %v597_v33 }
 0x3a0   :  { %3264 = vmatpush3.bf16.msra.mxu0 %v3532_v41  ;;  %3267 = vmatprep.mubr.msk.bf16.mxu0 %vm162_vm0, %v4017_v5 }
 0x3a1   :  { %v596_v55 = vpack.c.bf16 %v592_v54, %v592_v54  ;;  %3265 = vmatprep.subr.bf16.mxu0 %v3533_v51 }
 0x3a3   :  { %3246 = vmatmul.mubr.msk.bf16.vlgmr.msra.gmra.mrb[20].mxu1 %vm361_vm2, %v596_v55 }
 0x3a4   :  { %3266 = vmatpush3.bf16.msra.mxu0 %v3533_v51  ;;  %3256 = vmatpush3.bf16.msra.mxu1 %v3534_v36 }
 0x3a5   :  { %3257 = vmatprep.subr.bf16.mxu1 %v3535_v56  ;;  %3259 = vmatprep.mubr.msk.bf16.mxu1 %vm162_vm0, %v4017_v5 }
 0x3a6   :  { %3279 = vmatprep.subr.bf16.mxu0 %v3838_v12 }
 0x3a7   :  { %3268 = vmatmul.mubr.msk.bf16.vlgmr.msra.gmra.mrb[20].mxu0 %vm162_vm0, %v4023_v8 }
 0x3a8   :  { %3258 = vmatpush3.bf16.msra.mxu1 %v3535_v56  ;;  %3281 = vmatprep.mubr.msk.bf16.mxu0 %vm3839_vm1, %v3838_v12 }
 0x3a9   :  { %3271 = vmatprep.subr.bf16.mxu1 %v3536_v57 }
 0x3ab   :  { %3260 = vmatmul.mubr.msk.bf16.vlgmr.msra.gmra.mrb[24].mxu1 %vm162_vm0, %v4023_v8 }
 0x3ac   :  { %3275 = vmatprep.mubr.msk.bf16.mxu1 %vm162_vm0, %v4017_v5  ;;  %3272 = vmatpush3.bf16.msra.mxu1 %v3536_v57 }
 0x3ad   :  { %3273 = vmatprep.subr.bf16.mxu1 %v3537_v58 }
 0x3b0   :  { %3274 = vmatpush3.bf16.msra.mxu1 %v3537_v58 }
 0x3b1   :  { %3285 = vmatprep.subr.bf16.mxu1 %v3838_v12 }
 0x3b3   :  { %3276 = vmatmul.mubr.msk.bf16.vlgmr.msra.gmra.mrb[28].mxu1 %vm162_vm0, %v4023_v8 }
 0x3b4   :  { %3287 = vmatprep.mubr.msk.bf16.mxu1 %vm3839_vm1, %v3838_v12 }
 0x46a   :  { %v4115_v59 = vpop.f32.mrb[12].mxu0 }
 0x46b   :  { %v3241_v60 = vpop.f32.mrb[13].mxu0 }
 0x46c   :  { %v688_v61 = vpop.f32.mrb[14].mxu0 }
 0x46d   :  { %v3242_v62 = vpop.f32.mrb[15].mxu0 }
 0x46e   :  { %v4117_v63 = vpop.f32.mrb[16].mxu1 }
 0x46f   :  { %v783_v0 = vpack.c.bf16 %v4115_v59, %v4117_v63  ;;  %v3235_v1 = vpop.f32.mrb[17].mxu1 }
 0x470   :  { %v642_v2 = vpop.f32.mrb[18].mxu1 }
 0x471   :  { %v3236_v3 = vpop.f32.mrb[19].mxu1 }
 0x472   :  { %v4121_v4 = vpop.f32.mrb[16].mxu0 }
 0x473   :  { %v3253_v6 = vpop.f32.mrb[17].mxu0 }
 0x474   :  { %v780_v7 = vpop.f32.mrb[18].mxu0 }
 0x475   :  { %v3254_v9 = vpop.f32.mrb[19].mxu0 }
 0x476   :  { %v4123_v10 = vpop.f32.mrb[20].mxu1 }
 0x477   :  { %v784_v11 = vpack.c.bf16 %v4121_v4, %v4123_v10  ;;  %v3247_v13 = vpop.f32.mrb[21].mxu1 }
 0x478   :  { %v734_v14 = vpop.f32.mrb[22].mxu1 }
 0x479   :  { %v3248_v15 = vpop.f32.mrb[23].mxu1 }
 0x47a   :  { %v3269_v16 = vpop.f32.mrb[20].mxu0 }
 0x47b   :  { %v903_v17 = vpop.f32.mrb[21].mxu0  ;;  %v990_v28 = vpack.c.bf16 %v3269_v16, %v3269_v16 }
 0x47c   :  { %v988_v18 = vpack.c.bf16 %v903_v17, %v903_v17  ;;  %v3270_v19 = vpop.f32.mrb[22].mxu0 }
 0x47d   :  { %v906_v20 = vpop.f32.mrb[23].mxu0  ;;  %v991_v30 = vpack.c.bf16 %v3270_v19, %v3270_v19  ;;  %v1094_v31 = vsel %vm361_vm2, %v990_v28, 0 }
 0x47e   :  { %v1002_v21 = vsel %vm361_vm2, %v988_v18, 0  ;;  %v989_v22 = vpack.c.bf16 %v906_v20, %v906_v20  ;;  %v3261_v23 = vpop.f32.mrb[24].mxu1 }
 0x47f   :  { %3280 = vmatpush3.bf16.xpose.msra.mxu0 %v1002_v21  ;;  %v837_v24 = vpop.f32.mrb[25].mxu1  ;;  %v1140_v34 = vsel %vm361_vm2, %v991_v30, 0  ;;  %v986_v35 = vpack.c.bf16 %v3261_v23, %v3261_v23 }
 0x480   :  { %v1048_v25 = vsel %vm361_vm2, %v989_v22, 0  ;;  %v3262_v26 = vpop.f32.mrb[26].mxu1  ;;  %3291 = vmatprep.subr.bf16.mxu0 %v3838_v12  ;;  %v984_v29 = vpack.c.bf16 %v837_v24, %v837_v24 }
 0x481   :  { %3286 = vmatpush3.bf16.xpose.msra.mxu1 %v1048_v25  ;;  %v840_v27 = vpop.f32.mrb[27].mxu1  ;;  %v987_v37 = vpack.c.bf16 %v3262_v26, %v3262_v26 }
 0x482   :  { %3297 = vmatprep.subr.bf16.mxu1 %v3838_v12  ;;  %v985_v32 = vpack.c.bf16 %v840_v27, %v840_v27 }
 0x486   :  { %3282 = vmatmul.mubr.msk.bf16.vlgmr.msra.gmra.mrb[24].mxu0 %vm361_vm2, %v984_v29  ;;  %v4147_v38 = vpop.f32.mrb[28].mxu1 }
 0x487   :  { %3292 = vmatpush3.bf16.xpose.msra.mxu0 %v1094_v31  ;;  %3293 = vmatprep.mubr.msk.bf16.mxu0 %vm3839_vm1, %v3838_v12  ;;  %v969_v39 = vpop.f32.mrb[29].mxu1 }
 0x488   :  { %3288 = vmatmul.mubr.msk.bf16.vlgmr.msra.gmra.mrb[32].mxu1 %vm361_vm2, %v985_v32  ;;  %3303 = vmatprep.subr.bf16.mxu0 %v3838_v12  ;;  %v992_v40 = vpack.c.bf16 %v969_v39, %v969_v39  ;;  %v4149_v41 = vpop.f32.mrb[30].mxu1 }
 0x489   :  { %3298 = vmatpush3.bf16.xpose.msra.mxu1 %v1140_v34  ;;  %3299 = vmatprep.mubr.msk.bf16.mxu1 %vm3839_vm1, %v3838_v12  ;;  %v972_v42 = vpop.f32.mrb[31].mxu1 }
 0x48a   :  { %3309 = vmatprep.subr.bf16.mxu1 %v3838_v12  ;;  %v1238_v43 = vsel %vm601_vm3, %v992_v40, 0  ;;  %v993_v44 = vpack.c.bf16 %v972_v42, %v972_v42 }
 0x48c   :  { %v1284_v45 = vsel %vm601_vm3, %v993_v44, 0 }
 0x48e   :  { %3294 = vmatmul.mubr.msk.bf16.vlgmr.msra.gmra.mrb[28].mxu0 %vm361_vm2, %v986_v35 }
 0x48f   :  { %3305 = vmatprep.mubr.msk.bf16.mxu0 %vm3839_vm1, %v3838_v12  ;;  %3304 = vmatpush3.bf16.msra.mxu0 %v1238_v43 }
 0x490   :  { %3300 = vmatmul.mubr.msk.bf16.vlgmr.msra.gmra.mrb[36].mxu1 %vm361_vm2, %v987_v37  ;;  %3315 = vmatprep.subr.bf16.mxu0 %v3838_v12 }
 0x491   :  { %3311 = vmatprep.mubr.msk.bf16.mxu1 %vm3839_vm1, %v3838_v12  ;;  %3310 = vmatpush3.bf16.msra.mxu1 %v1284_v45 }
 0x492   :  { %3321 = vmatprep.subr.bf16.mxu1 %v3838_v12 }
 0x559   :  { %v1038_v36 = vpop.f32.mrb[24].mxu0 }
 0x55a   :  { %v1039_v48 = vadd.f32 %v1038_v36, %v997_v47  ;;  %v3283_v49 = vpop.f32.mrb[25].mxu0 }
 0x55b   :  { %v1041_v50 = vpop.f32.mrb[26].mxu0  ;;  %v1084_v33 = vpop.f32.mrb[32].mxu1  ;;  %v994_v49 = vpack.c.bf16 %v4147_v38, %v4147_v38 }
 0x55c   :  { %v1085_v51 = vadd.f32 %v1084_v33, %v997_v47  ;;  %v3284_v53 = vpop.f32.mrb[27].mxu0  ;;  %v3289_v54 = vpop.f32.mrb[33].mxu1  ;;  %v1182_v55 = vadd.f32 %v1039_v48, %v4069_v52 }
 0x55d   :  { %v1087_v56 = vpop.f32.mrb[34].mxu1 }
 0x55e   :  { %v3290_v57 = vpop.f32.mrb[35].mxu1  ;;  %v1186_v58 = vsel %vm361_vm2, %v1182_v55, -inf  ;;  %v1183_v60 = vadd.f32 %v1085_v51, %v4067_v46  ;;  %v995_v51 = vpack.c.bf16 %v4149_v41, %v4149_v41 }
 0x55f   :  { %1187 = vmax.xlane.f32.xlu0 %v1186_v58  ;;  %v3538_v57 = vld [vmem:[#allocation5 + $0x20] sm:$0xff]  }
 0x560   :  { %v1189_v61 = vsel %vm361_vm2, %v1183_v60, -inf  ;;  %v1376_v58 = vsel %vm601_vm3, %v995_v51, 0 }
 0x561   :  { %v1130_v62 = vpop.f32.mrb[28].mxu0  ;;  %1190 = vmax.xlane.f32.xlu1 %v1189_v61 }
 0x562   :  { %v1131_v1 = vadd.f32 %v1130_v62, %v997_v47  ;;  %v3295_v2 = vpop.f32.mrb[29].mxu0 }
 0x563   :  { %v1133_v3 = vpop.f32.mrb[30].mxu0  ;;  %v1176_v6 = vpop.f32.mrb[36].mxu1  ;;  %v3539_v2 = vld [vmem:[#allocation5 + $0x28] sm:$0xff]  }
 0x564   :  { %v1177_v7 = vadd.f32 %v1176_v6, %v997_v47  ;;  %v3296_v9 = vpop.f32.mrb[31].mxu0  ;;  %v3301_v13 = vpop.f32.mrb[37].mxu1  ;;  %v1184_v14 = vadd.f32 %v1131_v1, %v4069_v52  ;;  %v3540_v3 = vld [vmem:[#allocation7 + $0x20] sm:$0xff]   ;;  %v3541_v6 = vld [vmem:[#allocation7 + $0x28] sm:$0xff]  }
 0x565   :  { %v1179_v15 = vpop.f32.mrb[38].mxu1  ;;  %v785_v13 = vld [vmem:[#allocation13] sm:$0xf] }
 0x566   :  { %v3302_v16 = vpop.f32.mrb[39].mxu1  ;;  %v1192_v17 = vsel %vm361_vm2, %v1184_v14, -inf  ;;  %v1185_v18 = vadd.f32 %v1177_v7, %v4067_v46  ;;  %v1421_v7 = vld [vmem:[#allocation13 + $0x4] sm:$0xf] }
 0x567   :  { %1193 = vmax.xlane.f32.xlu0 %v1192_v17  ;;  %v1429_v9 = vsel %vm601_vm3, %v1421_v7, 0 }
 0x568   :  { %v1195_v19 = vsel %vm361_vm2, %v1185_v18, -inf }
 0x569   :  { %1196 = vmax.xlane.f32.xlu1 %v1195_v19 }
 0x5ec   :  { %v1188_v20 = vpop.xlane.xlu0 %1187 }
 0x5ed   :  { %v1198_v21 = vsub.f32 %v1182_v55, %v1188_v20  ;;  %v1330_v55 = vsel %vm601_vm3, %v994_v49, 0 }
 0x5ee   :  { %v1191_v22 = vpop.xlane.xlu1 %1190 }
 0x5ef   :  { %v1202_v23 = vmul.f32 1.442695, %v1198_v21  ;;  %v1199_v24 = vsub.f32 %v1183_v60, %v1191_v22 }
 0x5f1   :  { %3566 = vpow2.f32 %v1202_v23  ;;  %v1204_v25 = vmul.f32 1.442695, %v1199_v24 }
 0x5f3   :  { %3568 = vpow2.f32 %v1204_v25 }
 0x5f4   :  { %v1194_v26 = vpop.xlane.xlu0 %1193 }
 0x5f5   :  { %v1200_v27 = vsub.f32 %v1184_v14, %v1194_v26 }
 0x5f6   :  { %v1197_v28 = vpop.xlane.xlu1 %1196 }
 0x5f7   :  { %v1206_v29 = vmul.f32 1.442695, %v1200_v27  ;;  %v1201_v30 = vsub.f32 %v1185_v18, %v1197_v28 }
 0x5f9   :  { %3570 = vpow2.f32 %v1206_v29  ;;  %v1208_v31 = vmul.f32 1.442695, %v1201_v30  ;;  %v1487_v30 = vsel %vm601_vm3, %v785_v13, 0 }
 0x5fb   :  { %v3567_v32 = vpop.eup %3566  ;;  %3572 = vpow2.f32 %v1208_v31  ;;  %v3542_v31 = vld [vmem:[#allocation8 + $0x20] sm:$0xff]  }
 0x5fc   :  { %v1210_v34 = vsel %vm361_vm2, %v3567_v32, 0.0 }
 0x5fd   :  { %v3569_v35 = vpop.eup %3568  ;;  %1211 = vadd.xlane.f32.xlu0 %v1210_v34 }
 0x5fe   :  { %v1213_v37 = vsel %vm361_vm2, %v3569_v35, 0.0 }
 0x5ff   :  { %1214 = vadd.xlane.f32.xlu1 %v1213_v37 }
 0x603   :  { %v3571_v39 = vpop.eup %3570 }
 0x604   :  { %v1216_v40 = vsel %vm361_vm2, %v3571_v39, 0.0 }
 0x605   :  { %v3573_v42 = vpop.eup %3572  ;;  %1217 = vadd.xlane.f32.xlu0 %v1216_v40 }
 0x606   :  { %v1219_v43 = vsel %vm361_vm2, %v3573_v42, 0.0 }
 0x607   :  { %1220 = vadd.xlane.f32.xlu1 %v1219_v43 }
 0x68a   :  { %v1212_v44 = vpop.xlane.xlu0 %1211 }
 0x68b   :  { %3574 = vrcp.f32 %v1212_v44 }
 0x68c   :  { %v1215_v45 = vpop.xlane.xlu1 %1214 }
 0x68d   :  { %3576 = vrcp.f32 %v1215_v45 }
 0x692   :  { %v1218_v47 = vpop.xlane.xlu0 %1217 }
 0x693   :  { %3578 = vrcp.f32 %v1218_v47 }
 0x694   :  { %v1221_v36 = vpop.xlane.xlu1 %1220 }
 0x695   :  { %v3575_v48 = vpop.eup %3574  ;;  %3580 = vrcp.f32 %v1221_v36 }
 0x696   :  { %v1226_v50 = vmul.f32 %v3575_v48, %v3567_v32 }
 0x697   :  { %v3577_v33 = vpop.eup %3576 }
 0x698   :  { %v1227_v53 = vmul.f32 %v3577_v33, %v3569_v35  ;;  %v1230_v54 = vpack.c.bf16 %v1226_v50, %v1226_v50 }
 0x69a   :  { %3306 = vmatmul.mubr.msk.bf16.vlgmr.msra.gmra.mrb[32].mxu0 %vm361_vm2, %v1230_v54  ;;  %v1231_v56 = vpack.c.bf16 %v1227_v53, %v1227_v53 }
 0x69b   :  { %3316 = vmatpush3.bf16.msra.mxu0 %v1330_v55  ;;  %3317 = vmatprep.mubr.msk.bf16.mxu0 %vm3839_vm1, %v3838_v12 }
 0x69c   :  { %3312 = vmatmul.mubr.msk.bf16.vlgmr.msra.gmra.mrb[40].mxu1 %vm361_vm2, %v1231_v56  ;;  %3507 = vmatprep.subr.msk.bf16.mxu0 %vm601_vm3, %v1421_v7 }
 0x69d   :  { %v3579_v38 = vpop.eup %3578  ;;  %3322 = vmatpush3.bf16.msra.mxu1 %v1376_v58  ;;  %3323 = vmatprep.mubr.msk.bf16.mxu1 %vm3839_vm1, %v3838_v12  ;;  %v1749_v58 = vld [vmem:[#allocation10 + $0x10] sm:$0xff] }
 0x69e   :  { %v1228_v41 = vmul.f32 %v3579_v38, %v3571_v39  ;;  %3339 = vmatprep.subr.bf16.mxu1 %v3538_v57 }
 0x69f   :  { %v3581_v60 = vpop.eup %3580 }
 0x6a0   :  { %v1229_v61 = vmul.f32 %v3581_v60, %v3573_v42  ;;  %v1232_v62 = vpack.c.bf16 %v1228_v41, %v1228_v41  ;;  %v3543_v42 = vld [vmem:[#allocation8 + $0x28] sm:$0xff]  }
 0x6a2   :  { %3318 = vmatmul.mubr.msk.bf16.vlgmr.msra.gmra.mrb[36].mxu0 %vm361_vm2, %v1232_v62  ;;  %v1233_v1 = vpack.c.bf16 %v1229_v61, %v1229_v61 }
 0x6a3   :  { %3328 = vmatpush3.bf16.msra.mxu0 %v1429_v9 }
 0x6a4   :  { %3324 = vmatmul.mubr.msk.bf16.vlgmr.msra.gmra.mrb[44].mxu1 %vm361_vm2, %v1233_v1  ;;  %3508 = vmatprep.subr.msk.bf16.mxu0 %vm601_vm3, %v785_v13 }
 0x6a5   :  { %3340 = vmatpush3.bf16.msra.mxu1 %v3538_v57  ;;  %3343 = vmatprep.mubr.msk.bf16.mxu1 %vm162_vm0, %v4017_v5 }
 0x6a6   :  { %3341 = vmatprep.subr.bf16.mxu1 %v3539_v2 }
 0x6a9   :  { %3342 = vmatpush3.bf16.msra.mxu1 %v3539_v2 }
 0x6aa   :  { %3347 = vmatprep.subr.bf16.mxu1 %v3540_v3 }
 0x6ac   :  { %3344 = vmatmul.mubr.msk.bf16.vlgmr.msra.gmra.mrb[48].mxu1 %vm162_vm0, %v4023_v8 }
 0x6ad   :  { %3348 = vmatpush3.bf16.msra.mxu1 %v3540_v3  ;;  %3351 = vmatprep.mubr.msk.bf16.mxu1 %vm162_vm0, %v4017_v5 }
 0x6ae   :  { %3349 = vmatprep.subr.bf16.mxu1 %v3541_v6 }
 0x6b1   :  { %3350 = vmatpush3.bf16.msra.mxu1 %v3541_v6 }
 0x6b2   :  { %3363 = vmatprep.subr.bf16.mxu1 %v3838_v12 }
 0x6b4   :  { %3352 = vmatmul.mubr.msk.bf16.vlgmr.msra.gmra.mrb[52].mxu1 %vm162_vm0, %v4023_v8 }
 0x6b5   :  { %3365 = vmatprep.mubr.msk.bf16.mxu1 %vm3839_vm1, %v3838_v12 }
 0x76d   :  { %v1274_v14 = vpop.f32.mrb[32].mxu0 }
 0x76e   :  { %v3307_v15 = vpop.f32.mrb[33].mxu0 }
 0x76f   :  { %v1277_v16 = vpop.f32.mrb[34].mxu0  ;;  %v1320_v17 = vpop.f32.mrb[40].mxu1 }
 0x770   :  { %v1418_v18 = vpack.c.bf16 %v1320_v17, %v1274_v14  ;;  %v3308_v19 = vpop.f32.mrb[35].mxu0  ;;  %v3313_v20 = vpop.f32.mrb[41].mxu1 }
 0x771   :  { %v1323_v21 = vpop.f32.mrb[42].mxu1 }
 0x772   :  { %v3314_v22 = vpop.f32.mrb[43].mxu1  ;;  %3329 = vmatprep.mubr.msk.bf16.mxu0 %vm361_vm2, %v1418_v18 }
 0x775   :  { %v1366_v23 = vpop.f32.mrb[36].mxu0 }
 0x776   :  { %v3319_v24 = vpop.f32.mrb[37].mxu0 }
 0x777   :  { %v1369_v25 = vpop.f32.mrb[38].mxu0  ;;  %v1412_v26 = vpop.f32.mrb[44].mxu1 }
 0x778   :  { %v1419_v27 = vpack.c.bf16 %v1412_v26, %v1366_v23  ;;  %v3320_v28 = vpop.f32.mrb[39].mxu0  ;;  %v3325_v29 = vpop.f32.mrb[45].mxu1 }
 0x779   :  { %v1415_v32 = vpop.f32.mrb[46].mxu1 }
 0x77a   :  { %v3326_v34 = vpop.f32.mrb[47].mxu1  ;;  %3330 = vmatmul.mubr.msk.bf16.vlgmr.msra.gmra.mrb[40].mxu0 %vm361_vm2, %v1419_v27 }
 0x77b   :  { %3334 = vmatpush3.bf16.msra.mxu0 %v1487_v30  ;;  %3335 = vmatprep.mubr.msk.bf16.mxu0 %vm361_vm2, %v783_v0 }
 0x77c   :  { %3355 = vmatprep.subr.bf16.mxu0 %v3542_v31 }
 0x77f   :  { %v3345_v35 = vpop.f32.mrb[48].mxu1 }
 0x780   :  { %v1589_v37 = vpop.f32.mrb[49].mxu1  ;;  %v1738_v49 = vpack.c.bf16 %v3345_v35, %v3345_v35 }
 0x781   :  { %v3346_v39 = vpop.f32.mrb[50].mxu1 }
 0x782   :  { %v1592_v40 = vpop.f32.mrb[51].mxu1  ;;  %v1739_v51 = vpack.c.bf16 %v3346_v39, %v3346_v39 }
 0x783   :  { %v1737_v50 = vpack.c.bf16 %v1592_v40, %v1592_v40 }
 0x786   :  { %3336 = vmatmul.mubr.msk.bf16.vlgmr.msra.gmra.mrb[40].mxu0 %vm361_vm2, %v784_v11  ;;  %v1736_v11 = vpack.c.bf16 %v1589_v37, %v1589_v37 }
 0x787   :  { %3356 = vmatpush3.bf16.msra.mxu0 %v3542_v31  ;;  %v3353_v43 = vpop.f32.mrb[52].mxu1  ;;  %3359 = vmatprep.mubr.msk.bf16.mxu0 %vm162_vm0, %v4017_v5 }
 0x788   :  { %v1655_v44 = vpop.f32.mrb[53].mxu1  ;;  %3357 = vmatprep.subr.bf16.mxu0 %v3543_v42  ;;  %v1742_v4 = vpack.c.bf16 %v3353_v43, %v3353_v43 }
 0x789   :  { %v1740_v59 = vpack.c.bf16 %v1655_v44, %v1655_v44  ;;  %v3354_v63 = vpop.f32.mrb[54].mxu1 }
 0x78a   :  { %v1658_v0 = vpop.f32.mrb[55].mxu1  ;;  %v1846_v47 = vsel %vm361_vm2, %v1742_v4, 0  ;;  %v1743_v48 = vpack.c.bf16 %v3354_v63, %v3354_v63 }
 0x78b   :  { %v1754_v45 = vsel %vm361_vm2, %v1740_v59, 0  ;;  %3358 = vmatpush3.bf16.msra.mxu0 %v3543_v42  ;;  %v1741_v10 = vpack.c.bf16 %v1658_v0, %v1658_v0 }
 0x78c   :  { %3364 = vmatpush3.bf16.xpose.msra.mxu1 %v1754_v45  ;;  %3369 = vmatprep.subr.bf16.mxu0 %v3838_v12  ;;  %v1892_v33 = vsel %vm361_vm2, %v1743_v48, 0 }
 0x78d   :  { %3375 = vmatprep.subr.bf16.mxu1 %v3838_v12  ;;  %v1800_v36 = vsel %vm361_vm2, %v1741_v10, 0 }
 0x78e   :  { %3360 = vmatmul.mubr.msk.bf16.vlgmr.msra.gmra.mrb[44].mxu0 %vm162_vm0, %v4023_v8 }
 0x78f   :  { %3371 = vmatprep.mubr.msk.bf16.mxu0 %vm3839_vm1, %v3838_v12 }
 0x793   :  { %3366 = vmatmul.mubr.msk.bf16.vlgmr.msra.gmra.mrb[56].mxu1 %vm361_vm2, %v1736_v11 }
 0x794   :  { %3370 = vmatpush3.bf16.xpose.msra.mxu0 %v1800_v36  ;;  %3376 = vmatpush3.bf16.xpose.msra.mxu1 %v1846_v47 }
 0x795   :  { %3377 = vmatprep.mubr.msk.bf16.mxu1 %vm3839_vm1, %v3838_v12  ;;  %3381 = vmatprep.subr.bf16.mxu0 %v3838_v12 }
 0x796   :  { %3387 = vmatprep.subr.bf16.mxu1 %v3838_v12 }
 0x79b   :  { %3372 = vmatmul.mubr.msk.bf16.vlgmr.msra.gmra.mrb[48].mxu0 %vm361_vm2, %v1737_v50  ;;  %3378 = vmatmul.mubr.msk.bf16.vlgmr.msra.gmra.mrb[60].mxu1 %vm361_vm2, %v1738_v49 }
 0x79c   :  { %3382 = vmatpush3.bf16.xpose.msra.mxu0 %v1892_v33  ;;  %3383 = vmatprep.mubr.msk.bf16.mxu0 %vm3839_vm1, %v3838_v12 }
 0x79d   :  { %3393 = vmatprep.subr.bf16.mxu0 %v3838_v12  ;;  %3389 = vmatprep.mubr.msk.bf16.mxu1 %vm3839_vm1, %v3838_v12 }
 0x7a3   :  { %3384 = vmatmul.mubr.msk.bf16.vlgmr.msra.gmra.mrb[52].mxu0 %vm361_vm2, %v1739_v51 }
 0x7a4   :  { %3395 = vmatprep.mubr.msk.bf16.mxu0 %vm3839_vm1, %v3838_v12 }
 0x861   :  { %v4233_v53 = vpop.f32.mrb[44].mxu0 }
 0x862   :  { %v1721_v54 = vpop.f32.mrb[45].mxu0 }
 0x863   :  { %v1744_v55 = vpack.c.bf16 %v1721_v54, %v1721_v54  ;;  %v4235_v56 = vpop.f32.mrb[46].mxu0  ;;  %v1746_v54 = vpack.c.bf16 %v4233_v53, %v4233_v53 }
 0x864   :  { %v1724_v57 = vpop.f32.mrb[47].mxu0 }
 0x865   :  { %v1990_v38 = vsel %vm601_vm3, %v1744_v55, 0  ;;  %v1745_v41 = vpack.c.bf16 %v1724_v57, %v1724_v57 }
 0x866   :  { %v1790_v60 = vpop.f32.mrb[56].mxu1  ;;  %3388 = vmatpush3.bf16.msra.mxu1 %v1990_v38  ;;  %v2082_v38 = vsel %vm601_vm3, %v1746_v54, 0 }
 0x867   :  { %v2036_v61 = vsel %vm601_vm3, %v1745_v41, 0  ;;  %v1791_v62 = vadd.f32 %v1790_v60, %v1749_v58  ;;  %v3367_v1 = vpop.f32.mrb[57].mxu1  ;;  %3399 = vmatprep.subr.bf16.mxu1 %v3838_v12 }
 0x868   :  { %v1793_v2 = vpop.f32.mrb[58].mxu1  ;;  %3394 = vmatpush3.bf16.msra.mxu0 %v2036_v61 }
 0x869   :  { %v3368_v3 = vpop.f32.mrb[59].mxu1  ;;  %v1934_v6 = vadd.f32 %v1791_v62, %v4069_v52  ;;  %3405 = vmatprep.subr.bf16.mxu0 %v3838_v12  ;;  %v1747_v62 = vpack.c.bf16 %v4235_v56, %v4235_v56  ;;  %v3546_v56 = vld [vmem:[#allocation7 + $0x30] sm:$0xff]  }
 0x86b   :  { %v1938_v7 = vsel %vm361_vm2, %v1934_v6, -inf }
 0x86c   :  { %1939 = vmax.xlane.f32.xlu0 %v1938_v7  ;;  %v2128_v7 = vsel %vm601_vm3, %v1747_v62, 0 }
 0x86e   :  { %v1836_v9 = vpop.f32.mrb[48].mxu0  ;;  %v1882_v13 = vpop.f32.mrb[60].mxu1 }
 0x86f   :  { %v1837_v14 = vadd.f32 %v1836_v9, %v1749_v58  ;;  %v3373_v15 = vpop.f32.mrb[49].mxu0  ;;  %v1883_v16 = vadd.f32 %v1882_v13, %v1749_v58  ;;  %v3379_v17 = vpop.f32.mrb[61].mxu1 }
 0x870   :  { %v1839_v18 = vpop.f32.mrb[50].mxu0  ;;  %v1885_v19 = vpop.f32.mrb[62].mxu1  ;;  %v3547_v15 = vld [vmem:[#allocation7 + $0x38] sm:$0xff]  }
 0x871   :  { %v3374_v20 = vpop.f32.mrb[51].mxu0  ;;  %v3380_v21 = vpop.f32.mrb[63].mxu1  ;;  %v1935_v22 = vadd.f32 %v1837_v14, %v4067_v46  ;;  %v1936_v23 = vadd.f32 %v1883_v16, %v4069_v52  ;;  %v2173_v16 = vld [vmem:[#allocation13 + $0x8] sm:$0xf]  ;;  %v3548_v18 = vld [vmem:[#allocation8 + $0x30] sm:$0xff]  }
 0x872   :  { %v2181_v17 = vsel %vm601_vm3, %v2173_v16, 0 }
 0x873   :  { %v1941_v24 = vsel %vm361_vm2, %v1935_v22, -inf  ;;  %v1944_v25 = vsel %vm361_vm2, %v1936_v23, -inf }
 0x874   :  { %1942 = vmax.xlane.f32.xlu1 %v1941_v24  ;;  %1945 = vmax.xlane.f32.xlu0 %v1944_v25 }
 0x876   :  { %v1928_v26 = vpop.f32.mrb[52].mxu0 }
 0x877   :  { %v1929_v27 = vadd.f32 %v1928_v26, %v1749_v58  ;;  %v3385_v28 = vpop.f32.mrb[53].mxu0  ;;  %v3544_v58 = vld [vmem:[#allocation5 + $0x30] sm:$0xff]  }
 0x878   :  { %v1931_v29 = vpop.f32.mrb[54].mxu0 }
 0x879   :  { %v3386_v30 = vpop.f32.mrb[55].mxu0  ;;  %v1937_v31 = vadd.f32 %v1929_v27, %v4067_v46 }
 0x87b   :  { %v1947_v32 = vsel %vm361_vm2, %v1937_v31, -inf }
 0x87c   :  { %1948 = vmax.xlane.f32.xlu1 %v1947_v32 }
 0x8f9   :  { %v1940_v34 = vpop.xlane.xlu0 %1939 }
 0x8fa   :  { %v1950_v35 = vsub.f32 %v1934_v6, %v1940_v34  ;;  %v3545_v6 = vld [vmem:[#allocation5 + $0x38] sm:$0xff]  }
 0x8fc   :  { %v1954_v37 = vmul.f32 1.442695, %v1950_v35 }
 0x8fe   :  { %3582 = vpow2.f32 %v1954_v37 }
 0x901   :  { %v1943_v52 = vpop.xlane.xlu1 %1942  ;;  %v1946_v39 = vpop.xlane.xlu0 %1945 }
 0x902   :  { %v1951_v40 = vsub.f32 %v1935_v22, %v1943_v52  ;;  %v1952_v42 = vsub.f32 %v1936_v23, %v1946_v39  ;;  %v3549_v52 = vld [vmem:[#allocation8 + $0x38] sm:$0xff]  }
 0x904   :  { %v1956_v43 = vmul.f32 1.442695, %v1951_v40  ;;  %v1958_v44 = vmul.f32 1.442695, %v1952_v42 }
 0x906   :  { %3584 = vpow2.f32 %v1956_v43 }
 0x907   :  { %3586 = vpow2.f32 %v1958_v44 }
 0x908   :  { %v3583_v59 = vpop.eup %3582 }
 0x909   :  { %v1949_v63 = vpop.xlane.xlu1 %1948  ;;  %v1962_v0 = vsel %vm361_vm2, %v3583_v59, 0.0 }
 0x90a   :  { %v1953_v46 = vsub.f32 %v1937_v31, %v1949_v63  ;;  %1963 = vadd.xlane.f32.xlu0 %v1962_v0 }
 0x90c   :  { %v1960_v45 = vmul.f32 1.442695, %v1953_v46 }
 0x90e   :  { %3588 = vpow2.f32 %v1960_v45 }
 0x910   :  { %v3585_v4 = vpop.eup %3584 }
 0x911   :  { %v3587_v10 = vpop.eup %3586  ;;  %v1965_v11 = vsel %vm361_vm2, %v3585_v4, 0.0 }
 0x912   :  { %1966 = vadd.xlane.f32.xlu1 %v1965_v11  ;;  %v1968_v47 = vsel %vm361_vm2, %v3587_v10, 0.0 }
 0x913   :  { %1969 = vadd.xlane.f32.xlu0 %v1968_v47 }
 0x918   :  { %v3589_v36 = vpop.eup %3588 }
 0x919   :  { %v1971_v48 = vsel %vm361_vm2, %v3589_v36, 0.0 }
 0x91a   :  { %1972 = vadd.xlane.f32.xlu1 %v1971_v48 }
 0x997   :  { %v1964_v49 = vpop.xlane.xlu0 %1963 }
 0x998   :  { %3590 = vrcp.f32 %v1964_v49 }
 0x99f   :  { %v1967_v50 = vpop.xlane.xlu1 %1966 }
 0x9a0   :  { %3592 = vrcp.f32 %v1967_v50  ;;  %v1970_v33 = vpop.xlane.xlu0 %1969 }
 0x9a1   :  { %3594 = vrcp.f32 %v1970_v33 }
 0x9a2   :  { %v3591_v51 = vpop.eup %3590 }
 0x9a3   :  { %v1978_v55 = vmul.f32 %v3591_v51, %v3583_v59 }
 0x9a5   :  { %v1982_v57 = vpack.c.bf16 %v1978_v55, %v1978_v55 }
 0x9a7   :  { %v1973_v41 = vpop.xlane.xlu1 %1972  ;;  %3390 = vmatmul.mubr.msk.bf16.vlgmr.msra.gmra.mrb[64].mxu1 %vm361_vm2, %v1982_v57 }
 0x9a8   :  { %3596 = vrcp.f32 %v1973_v41  ;;  %3400 = vmatpush3.bf16.msra.mxu1 %v2082_v38  ;;  %3401 = vmatprep.mubr.msk.bf16.mxu1 %vm3839_vm1, %v3838_v12 }
 0x9a9   :  { %3417 = vmatprep.subr.bf16.mxu1 %v3544_v58 }
 0x9aa   :  { %v3593_v60 = vpop.eup %3592 }
 0x9ab   :  { %v3595_v61 = vpop.eup %3594  ;;  %v1979_v53 = vmul.f32 %v3593_v60, %v3585_v4 }
 0x9ac   :  { %v1980_v1 = vmul.f32 %v3595_v61, %v3587_v10  ;;  %v2447_v61 = vld [vmem:[#allocation10 + $0x18] sm:$0xff] }
 0x9ad   :  { %v1983_v2 = vpack.c.bf16 %v1979_v53, %v1979_v53 }
 0x9ae   :  { %v1984_v3 = vpack.c.bf16 %v1980_v1, %v1980_v1 }
 0x9af   :  { %3396 = vmatmul.mubr.msk.bf16.vlgmr.msra.gmra.mrb[56].mxu0 %vm361_vm2, %v1983_v2 }
 0x9b0   :  { %3406 = vmatpush3.bf16.msra.mxu0 %v2128_v7  ;;  %3402 = vmatmul.mubr.msk.bf16.vlgmr.msra.gmra.mrb[68].mxu1 %vm361_vm2, %v1984_v3  ;;  %v3614_v7 = vld [vmem:[#allocation11] sm:$0xff] }
 0x9b1   :  { %3418 = vmatpush3.bf16.msra.mxu1 %v3544_v58  ;;  %3407 = vmatprep.mubr.msk.bf16.mxu0 %vm3839_vm1, %v3838_v12 }
 0x9b2   :  { %v3597_v9 = vpop.eup %3596  ;;  %3419 = vmatprep.subr.bf16.mxu1 %v3545_v6  ;;  %3421 = vmatprep.mubr.msk.bf16.mxu1 %vm162_vm0, %v4017_v5 }
 0x9b3   :  { %v1981_v13 = vmul.f32 %v3597_v9, %v3589_v36  ;;  %3509 = vmatprep.subr.msk.bf16.mxu0 %vm601_vm3, %v2173_v16 }
 0x9b5   :  { %3420 = vmatpush3.bf16.msra.mxu1 %v3545_v6  ;;  %v1985_v14 = vpack.c.bf16 %v1981_v13, %v1981_v13 }
 0x9b6   :  { %3425 = vmatprep.subr.bf16.mxu1 %v3546_v56 }
 0x9b7   :  { %3408 = vmatmul.mubr.msk.bf16.vlgmr.msra.gmra.mrb[60].mxu0 %vm361_vm2, %v1985_v14 }
 0x9b8   :  { %3422 = vmatmul.mubr.msk.bf16.vlgmr.msra.gmra.mrb[72].mxu1 %vm162_vm0, %v4023_v8  ;;  %3412 = vmatpush3.bf16.msra.mxu0 %v2181_v17  ;;  %v3615_v17 = vld [vmem:[#allocation11 + $0x8] sm:$0xff] }
 0x9b9   :  { %3426 = vmatpush3.bf16.msra.mxu1 %v3546_v56  ;;  %3429 = vmatprep.mubr.msk.bf16.mxu1 %vm162_vm0, %v4017_v5 }
 0x9ba   :  { %3427 = vmatprep.subr.bf16.mxu1 %v3547_v15  ;;  %3433 = vmatprep.subr.bf16.mxu0 %v3548_v18 }
 0x9bd   :  { %3428 = vmatpush3.bf16.msra.mxu1 %v3547_v15 }
 0x9be   :  { %3441 = vmatprep.subr.bf16.mxu1 %v3838_v12 }
 0x9c0   :  { %3430 = vmatmul.mubr.msk.bf16.vlgmr.msra.gmra.mrb[76].mxu1 %vm162_vm0, %v4023_v8 }
 0x9c1   :  { %3443 = vmatprep.mubr.msk.bf16.mxu1 %vm3839_vm1, %v3838_v12 }
 0xa7a   :  { %v2026_v19 = vpop.f32.mrb[64].mxu1 }
 0xa7b   :  { %v3391_v20 = vpop.f32.mrb[65].mxu1 }
 0xa7c   :  { %v2029_v21 = vpop.f32.mrb[66].mxu1 }
 0xa7d   :  { %v3392_v22 = vpop.f32.mrb[67].mxu1 }
 0xa82   :  { %v2072_v23 = vpop.f32.mrb[56].mxu0 }
 0xa83   :  { %v2170_v24 = vpack.c.bf16 %v2072_v23, %v2026_v19  ;;  %v3397_v25 = vpop.f32.mrb[57].mxu0  ;;  %v2118_v26 = vpop.f32.mrb[68].mxu1 }
 0xa84   :  { %v2075_v27 = vpop.f32.mrb[58].mxu0  ;;  %v3403_v28 = vpop.f32.mrb[69].mxu1 }
 0xa85   :  { %v3398_v29 = vpop.f32.mrb[59].mxu0  ;;  %v2121_v30 = vpop.f32.mrb[70].mxu1  ;;  %3413 = vmatprep.mubr.msk.bf16.mxu0 %vm361_vm2, %v2170_v24 }
 0xa86   :  { %v3404_v31 = vpop.f32.mrb[71].mxu1 }
 0xa8a   :  { %v2164_v32 = vpop.f32.mrb[60].mxu0 }
 0xa8b   :  { %v2171_v34 = vpack.c.bf16 %v2164_v32, %v2118_v26  ;;  %v3409_v35 = vpop.f32.mrb[61].mxu0  ;;  %v3423_v37 = vpop.f32.mrb[72].mxu1 }
 0xa8c   :  { %v2167_v39 = vpop.f32.mrb[62].mxu0  ;;  %v2287_v40 = vpop.f32.mrb[73].mxu1  ;;  %v2436_v50 = vpack.c.bf16 %v3423_v37, %v3423_v37 }
 0xa8d   :  { %v3410_v42 = vpop.f32.mrb[63].mxu0  ;;  %3414 = vmatmul.mubr.msk.bf16.vlgmr.msra.gmra.mrb[40].mxu0 %vm361_vm2, %v2171_v34  ;;  %v3424_v43 = vpop.f32.mrb[74].mxu1  ;;  %v2434_v47 = vpack.c.bf16 %v2287_v40, %v2287_v40 }
 0xa8e   :  { %3434 = vmatpush3.bf16.msra.mxu0 %v3548_v18  ;;  %v2290_v44 = vpop.f32.mrb[75].mxu1  ;;  %3437 = vmatprep.mubr.msk.bf16.mxu0 %vm162_vm0, %v4017_v5  ;;  %v2437_v33 = vpack.c.bf16 %v3424_v43, %v3424_v43 }
 0xa8f   :  { %3435 = vmatprep.subr.bf16.mxu0 %v3549_v52  ;;  %v2435_v48 = vpack.c.bf16 %v2290_v44, %v2290_v44 }
 0xa92   :  { %3436 = vmatpush3.bf16.msra.mxu0 %v3549_v52 }
 0xa93   :  { %v3431_v59 = vpop.f32.mrb[76].mxu1  ;;  %3447 = vmatprep.subr.bf16.mxu0 %v3838_v12 }
 0xa94   :  { %v2353_v63 = vpop.f32.mrb[77].mxu1  ;;  %v2440_v11 = vpack.c.bf16 %v3431_v59, %v3431_v59 }
 0xa95   :  { %v2438_v0 = vpack.c.bf16 %v2353_v63, %v2353_v63  ;;  %v3432_v46 = vpop.f32.mrb[78].mxu1  ;;  %3438 = vmatmul.mubr.msk.bf16.vlgmr.msra.gmra.mrb[64].mxu0 %vm162_vm0, %v4023_v8 }
 0xa96   :  { %v2356_v45 = vpop.f32.mrb[79].mxu1  ;;  %3449 = vmatprep.mubr.msk.bf16.mxu0 %vm3839_vm1, %v3838_v12  ;;  %v2441_v36 = vpack.c.bf16 %v3432_v46, %v3432_v46  ;;  %v2544_v8 = vsel %vm361_vm2, %v2440_v11, 0 }
 0xa97   :  { %v2452_v4 = vsel %vm361_vm2, %v2438_v0, 0  ;;  %v2439_v10 = vpack.c.bf16 %v2356_v45, %v2356_v45 }
 0xa98   :  { %3442 = vmatpush3.bf16.xpose.msra.mxu1 %v2452_v4  ;;  %v2590_v49 = vsel %vm361_vm2, %v2441_v36, 0 }
 0xa99   :  { %v2498_v5 = vsel %vm361_vm2, %v2439_v10, 0  ;;  %3453 = vmatprep.subr.bf16.mxu1 %v3838_v12 }
 0xa9b   :  { %3448 = vmatpush3.bf16.xpose.msra.mxu0 %v2498_v5 }
 0xa9c   :  { %3459 = vmatprep.subr.bf16.mxu0 %v3838_v12 }
 0xa9f   :  { %3444 = vmatmul.mubr.msk.bf16.vlgmr.msra.gmra.mrb[80].mxu1 %vm361_vm2, %v2434_v47 }
 0xaa0   :  { %3454 = vmatpush3.bf16.xpose.msra.mxu1 %v2544_v8  ;;  %3455 = vmatprep.mubr.msk.bf16.mxu1 %vm3839_vm1, %v3838_v12 }
 0xaa1   :  { %3465 = vmatprep.subr.bf16.mxu1 %v3838_v12 }
 0xaa2   :  { %3450 = vmatmul.mubr.msk.bf16.vlgmr.msra.gmra.mrb[68].mxu0 %vm361_vm2, %v2435_v48 }
 0xaa3   :  { %3460 = vmatpush3.bf16.xpose.msra.mxu0 %v2590_v49  ;;  %3461 = vmatprep.mubr.msk.bf16.mxu0 %vm3839_vm1, %v3838_v12 }
 0xaa4   :  { %3471 = vmatprep.subr.bf16.mxu0 %v3838_v12 }
 0xaa7   :  { %3456 = vmatmul.mubr.msk.bf16.vlgmr.msra.gmra.mrb[84].mxu1 %vm361_vm2, %v2436_v50 }
 0xaa8   :  { %3467 = vmatprep.mubr.msk.bf16.mxu1 %vm3839_vm1, %v3838_v12 }
 0xaaa   :  { %3462 = vmatmul.mubr.msk.bf16.vlgmr.msra.gmra.mrb[72].mxu0 %vm361_vm2, %v2437_v33 }
 0xaab   :  { %3473 = vmatprep.mubr.msk.bf16.mxu0 %vm3839_vm1, %v3838_v12 }
 0xb68   :  { %v4309_v51 = vpop.f32.mrb[64].mxu0 }
 0xb69   :  { %v2419_v54 = vpop.f32.mrb[65].mxu0 }
 0xb6a   :  { %v2442_v55 = vpack.c.bf16 %v2419_v54, %v2419_v54  ;;  %v4311_v57 = vpop.f32.mrb[66].mxu0 }
 0xb6b   :  { %v2422_v58 = vpop.f32.mrb[67].mxu0 }
 0xb6c   :  { %v2688_v38 = vsel %vm601_vm3, %v2442_v55, 0  ;;  %v2443_v41 = vpack.c.bf16 %v2422_v58, %v2422_v58  ;;  %v2444_v55 = vpack.c.bf16 %v4309_v51, %v4309_v51 }
 0xb6d   :  { %3466 = vmatpush3.bf16.msra.mxu1 %v2688_v38 }
 0xb6e   :  { %v2734_v60 = vsel %vm601_vm3, %v2443_v41, 0  ;;  %3477 = vmatprep.subr.bf16.mxu1 %v3838_v12 }
 0xb6f   :  { %3472 = vmatpush3.bf16.msra.mxu0 %v2734_v60  ;;  %v2445_v60 = vpack.c.bf16 %v4311_v57, %v4311_v57 }
 0xb70   :  { %3483 = vmatprep.subr.bf16.mxu0 %v3838_v12 }
 0xb71   :  { %v2826_v51 = vsel %vm601_vm3, %v2445_v60, 0 }
 0xb72   :  { %v2488_v62 = vpop.f32.mrb[80].mxu1 }
 0xb73   :  { %v2489_v53 = vadd.f32 %v2488_v62, %v2447_v61  ;;  %v3445_v1 = vpop.f32.mrb[81].mxu1  ;;  %v2780_v62 = vsel %vm601_vm3, %v2444_v55, 0 }
 0xb74   :  { %v2491_v2 = vpop.f32.mrb[82].mxu1 }
 0xb75   :  { %v2534_v3 = vpop.f32.mrb[68].mxu0  ;;  %v3446_v6 = vpop.f32.mrb[83].mxu1  ;;  %v2632_v9 = vadd.f32 %v3614_v7, %v2489_v53 }
 0xb76   :  { %v2535_v56 = vadd.f32 %v2534_v3, %v2447_v61  ;;  %v3451_v13 = vpop.f32.mrb[69].mxu0 }
 0xb77   :  { %v2537_v14 = vpop.f32.mrb[70].mxu0  ;;  %v2636_v15 = vsel %vm361_vm2, %v2632_v9, -inf }
 0xb78   :  { %v3452_v16 = vpop.f32.mrb[71].mxu0  ;;  %2637 = vmax.xlane.f32.xlu0 %v2636_v15  ;;  %v2633_v18 = vadd.f32 %v3615_v17, %v2535_v56 }
 0xb7a   :  { %v2580_v19 = vpop.f32.mrb[84].mxu1  ;;  %v2639_v20 = vsel %vm361_vm2, %v2633_v18, -inf }
 0xb7b   :  { %v2581_v21 = vadd.f32 %v2580_v19, %v2447_v61  ;;  %2640 = vmax.xlane.f32.xlu1 %v2639_v20  ;;  %v3457_v22 = vpop.f32.mrb[85].mxu1 }
 0xb7c   :  { %v2583_v23 = vpop.f32.mrb[86].mxu1 }
 0xb7d   :  { %v2626_v24 = vpop.f32.mrb[72].mxu0  ;;  %v3458_v25 = vpop.f32.mrb[87].mxu1  ;;  %v2634_v26 = vadd.f32 %v3614_v7, %v2581_v21 }
 0xb7e   :  { %v2627_v27 = vadd.f32 %v2626_v24, %v2447_v61  ;;  %v3463_v28 = vpop.f32.mrb[73].mxu0 }
 0xb7f   :  { %v2629_v29 = vpop.f32.mrb[74].mxu0  ;;  %v2642_v30 = vsel %vm361_vm2, %v2634_v26, -inf }
 0xb80   :  { %v3464_v31 = vpop.f32.mrb[75].mxu0  ;;  %2643 = vmax.xlane.f32.xlu0 %v2642_v30  ;;  %v2635_v32 = vadd.f32 %v3615_v17, %v2627_v27  ;;  %v3058_v30 = vld [vmem:[#allocation14] ss:$0 sm:$0xff] }
 0xb82   :  { %v2645_v34 = vsel %vm361_vm2, %v2635_v32, -inf }
 0xb83   :  { %2646 = vmax.xlane.f32.xlu1 %v2645_v34 }
 0xc05   :  { %v2638_v35 = vpop.xlane.xlu0 %2637 }
 0xc06   :  { %v2648_v37 = vsub.f32 %v2632_v9, %v2638_v35  ;;  %v2871_v9 = vld [vmem:[#allocation13 + $0xc] sm:$0xf] }
 0xc07   :  { %v2879_v56 = vsel %vm601_vm3, %v2871_v9, 0 }
 0xc08   :  { %v2652_v52 = vmul.f32 1.442695, %v2648_v37  ;;  %v2641_v39 = vpop.xlane.xlu1 %2640 }
 0xc09   :  { %v2649_v40 = vsub.f32 %v2633_v18, %v2641_v39 }
 0xc0a   :  { %3598 = vpow2.f32 %v2652_v52 }
 0xc0b   :  { %v2654_v42 = vmul.f32 1.442695, %v2649_v40 }
 0xc0d   :  { %3600 = vpow2.f32 %v2654_v42  ;;  %v2644_v43 = vpop.xlane.xlu0 %2643 }
 0xc0e   :  { %v2650_v44 = vsub.f32 %v2634_v26, %v2644_v43 }
 0xc10   :  { %v2656_v59 = vmul.f32 1.442695, %v2650_v44  ;;  %v2647_v63 = vpop.xlane.xlu1 %2646 }
 0xc11   :  { %v2651_v0 = vsub.f32 %v2635_v32, %v2647_v63 }
 0xc12   :  { %3602 = vpow2.f32 %v2656_v59 }
 0xc13   :  { %v2658_v46 = vmul.f32 1.442695, %v2651_v0 }
 0xc14   :  { %v3599_v45 = vpop.eup %3598 }
 0xc15   :  { %3604 = vpow2.f32 %v2658_v46  ;;  %v2660_v4 = vsel %vm361_vm2, %v3599_v45, 0.0 }
 0xc16   :  { %2661 = vadd.xlane.f32.xlu0 %v2660_v4 }
 0xc17   :  { %v3601_v10 = vpop.eup %3600 }
 0xc18   :  { %v2663_v5 = vsel %vm361_vm2, %v3601_v10, 0.0 }
 0xc19   :  { %2664 = vadd.xlane.f32.xlu1 %v2663_v5 }
 0xc1c   :  { %v3603_v11 = vpop.eup %3602 }
 0xc1d   :  { %v2666_v47 = vsel %vm361_vm2, %v3603_v11, 0.0 }
 0xc1e   :  { %2667 = vadd.xlane.f32.xlu0 %v2666_v47 }
 0xc1f   :  { %v3605_v36 = vpop.eup %3604 }
 0xc20   :  { %v2669_v8 = vsel %vm361_vm2, %v3605_v36, 0.0 }
 0xc21   :  { %2670 = vadd.xlane.f32.xlu1 %v2669_v8 }
 0xca3   :  { %v2662_v48 = vpop.xlane.xlu0 %2661 }
 0xca4   :  { %3606 = vrcp.f32 %v2662_v48 }
 0xca6   :  { %v2665_v49 = vpop.xlane.xlu1 %2664 }
 0xca7   :  { %3608 = vrcp.f32 %v2665_v49 }
 0xcab   :  { %v2668_v50 = vpop.xlane.xlu0 %2667 }
 0xcac   :  { %3610 = vrcp.f32 %v2668_v50 }
 0xcae   :  { %v3607_v33 = vpop.eup %3606  ;;  %v2671_v54 = vpop.xlane.xlu1 %2670 }
 0xcaf   :  { %v2676_v58 = vmul.f32 %v3607_v33, %v3599_v45  ;;  %3612 = vrcp.f32 %v2671_v54 }
 0xcb1   :  { %v3609_v38 = vpop.eup %3608  ;;  %v2680_v41 = vpack.c.bf16 %v2676_v58, %v2676_v58 }
 0xcb2   :  { %v2677_v61 = vmul.f32 %v3609_v38, %v3601_v10 }
 0xcb3   :  { %3468 = vmatmul.mubr.msk.bf16.vlgmr.msra.gmra.mrb[88].mxu1 %vm361_vm2, %v2680_v41 }
 0xcb4   :  { %3478 = vmatpush3.bf16.msra.mxu1 %v2780_v62  ;;  %v2681_v53 = vpack.c.bf16 %v2677_v61, %v2677_v61  ;;  %3479 = vmatprep.mubr.msk.bf16.mxu1 %vm3839_vm1, %v3838_v12 }
 0xcb6   :  { %v3611_v1 = vpop.eup %3610  ;;  %3474 = vmatmul.mubr.msk.bf16.vlgmr.msra.gmra.mrb[76].mxu0 %vm361_vm2, %v2681_v53 }
 0xcb7   :  { %v2678_v2 = vmul.f32 %v3611_v1, %v3603_v11  ;;  %3484 = vmatpush3.bf16.msra.mxu0 %v2826_v51  ;;  %3485 = vmatprep.mubr.msk.bf16.mxu0 %vm3839_vm1, %v3838_v12 }
 0xcb8   :  { %3510 = vmatprep.subr.msk.bf16.mxu0 %vm601_vm3, %v2871_v9 }
 0xcb9   :  { %v3613_v57 = vpop.eup %3612  ;;  %v2682_v3 = vpack.c.bf16 %v2678_v2, %v2678_v2 }
 0xcba   :  { %v2679_v6 = vmul.f32 %v3613_v57, %v3605_v36 }
 0xcbb   :  { %3480 = vmatmul.mubr.msk.bf16.vlgmr.msra.gmra.mrb[92].mxu1 %vm361_vm2, %v2682_v3 }
 0xcbc   :  { %v2683_v7 = vpack.c.bf16 %v2679_v6, %v2679_v6 }
 0xcbe   :  { %3486 = vmatmul.mubr.msk.bf16.vlgmr.msra.gmra.mrb[80].mxu0 %vm361_vm2, %v2683_v7 }
 0xcbf   :  { %3490 = vmatpush3.bf16.msra.mxu0 %v2879_v56 }
 0xd86   :  { %v2724_v13 = vpop.f32.mrb[88].mxu1 }
 0xd87   :  { %v3469_v14 = vpop.f32.mrb[89].mxu1 }
 0xd88   :  { %v2727_v15 = vpop.f32.mrb[90].mxu1 }
 0xd89   :  { %v2770_v16 = vpop.f32.mrb[76].mxu0  ;;  %v3470_v17 = vpop.f32.mrb[91].mxu1 }
 0xd8a   :  { %v2868_v12 = vpack.c.bf16 %v2770_v16, %v2724_v13  ;;  %v3475_v18 = vpop.f32.mrb[77].mxu0 }
 0xd8b   :  { %v2773_v19 = vpop.f32.mrb[78].mxu0 }
 0xd8c   :  { %v3476_v20 = vpop.f32.mrb[79].mxu0  ;;  %3491 = vmatprep.mubr.msk.bf16.mxu0 %vm361_vm2, %v2868_v12 }
 0xd8e   :  { %v2816_v21 = vpop.f32.mrb[92].mxu1 }
 0xd8f   :  { %v3481_v22 = vpop.f32.mrb[93].mxu1 }
 0xd90   :  { %v2819_v23 = vpop.f32.mrb[94].mxu1 }
 0xd91   :  { %v2862_v24 = vpop.f32.mrb[80].mxu0  ;;  %v3482_v25 = vpop.f32.mrb[95].mxu1 }
 0xd92   :  { %v2869_v26 = vpack.c.bf16 %v2862_v24, %v2816_v21  ;;  %v3487_v27 = vpop.f32.mrb[81].mxu0 }
 0xd93   :  { %v2865_v28 = vpop.f32.mrb[82].mxu0 }
 0xd94   :  { %v3488_v29 = vpop.f32.mrb[83].mxu0  ;;  %3492 = vmatmul.mubr.msk.bf16.vlgmr.msra.gmra.mrb[40].mxu0 %vm361_vm2, %v2869_v26 }
 0xe67   :  { %v3493_v31 = vpop.f32.mrb[40].mxu0 }
 0xe68   :  { %v2943_v32 = vadd.f32 %v3493_v31, %v3058_v30  ;;  %v2915_v34 = vpop.f32.mrb[41].mxu0 }
 0xe69   :  { %v2941_v35 = vadd.f32 %v3058_v30, %v2915_v34  ;;  %v3494_v37 = vpop.f32.mrb[42].mxu0 }
 0xe6a   :  { %2947 = vst.msk [vmem:[#allocation16 + $0x10] sm:$0xff] %vm162_vm0, %v2943_v32  ;;  %v2944_v52 = vadd.f32 %v3494_v37, %v3058_v30  ;;  %v2918_v39 = vpop.f32.mrb[43].mxu0 }
 0xe6b   :  { %2945 = vst.msk [vmem:[#allocation16] sm:$0xff] %vm162_vm0, %v2941_v35  ;;  %v2942_v40 = vadd.f32 %v3058_v30, %v2918_v39 }
 0xe6c   :  { %2948 = vst.msk [vmem:[#allocation16 + $0x18] sm:$0xff] %vm162_vm0, %v2944_v52 }
 0xe6d   :  { %2946 = vst.msk [vmem:[#allocation16 + $0x8] sm:$0xff] %vm162_vm0, %v2942_v40 }
 0xe6e   :  { %3803 = shalt.err (!%p3800_p12)
}
 0xe6f   :  { %s3804_s18 = scalar_lea.hbm %s4370_s8, 512 }
 0xe70   :  { %p3805_p13 = scmp.ne.s32.totalorder %s4370_s8, %s3804_s18  ;;  %p3808_p0 = scmp.lt.u32.totalorder %s3804_s18, %s4370_s8 }
 0xe72   :  { %p3810_p1 = pnand %p3808_p0, %p3805_p13 }
 0xe74   :  { %3813 = shalt.err (!%p3810_p1)
}
 0xe75   :  { %2960 = dma.vmem_to_hbm [thread:$0]  %s2955_s16, 512, %s4370_s8, [#allocation4], %s3832_s20, %s3832_s20, %s3833_s22  }
 0xe76   :  { %3824 = dma.done.wait [#allocation4], 512  }
 0xe77   :  { %3825 = vsyncadd [#allocation4], 4294966784 }
 0xe78   :  { %2964 = vsyncpa [#allocation3], 1 }
 0xe79   :  { %2965 = vsyncpa [#allocation6], 1 }
 0xe7a   :  { %2966 = vsyncpa [#allocation9], 1 }
 0xe7b   :  { %2967 = vsyncpa [#allocation12], 1 }
 0xe7c   :  { %2968 = vsyncpa [#allocation15], 1 }
 0xe7d   :  { %2969 = vsyncpa [#allocation4], 1 }

</bundles_post_ra>
